<compile_context>
chip_gen: v5e
topology: v5e:2x2
jax: 0.10.0
libtpu: 0.0.40
codegen_flags: <defaults>
</compile_context>

<pallas_src>
import math
import jax
import jax.numpy as jnp
from jax import lax
from jax.experimental import pallas as pl
from jax.experimental.pallas import tpu as pltpu

# Small, consistent model dims (scaled-down from d_model=512/d_ff=2048/etc.)
D_MODEL = 32
D_FF = 64
NUM_HEADS = 4
NUM_LAYERS = 2
BATCH = 2
SEQ = 8
VOCAB = 100
HEAD_DIM = D_MODEL // NUM_HEADS
LN_EPS = 1e-5
BIAS_LANES = 128  # each small bias/gain vector is padded to one 128-lane row

# TODO(synk): dropout (p=0.1 in nn.TransformerEncoderLayer) is omitted — forward
# is implemented in eval-mode semantics for determinism.


def encoder_stack_kernel(x_ref, wqkv_ref, wo_ref, w1_ref, w2_ref, bias_ref, o_ref):
    # x: (B*S, D) — batch folded into the matmul row dimension.
    x = x_ref[...]
    scale = 1.0 / math.sqrt(HEAD_DIM)

    for l in range(NUM_LAYERS):  # static unroll over layers; weights stay in VMEM
        wqkv = wqkv_ref[l]       # (D, 3D)   pre-transposed
        wo = wo_ref[l]           # (D, D)    pre-transposed
        w1 = w1_ref[l]           # (D, D_FF) pre-transposed
        w2 = w2_ref[l]           # (D_FF, D) pre-transposed
        bb = bias_ref[l]         # (8, 128)  packed biases / LN gains
        bqkv = bb[0:1, :3 * D_MODEL]
        bo = bb[1:2, :D_MODEL]
        g1 = bb[2:3, :D_MODEL]
        be1 = bb[3:4, :D_MODEL]
        bf1 = bb[4:5, :D_FF]
        bf2 = bb[5:6, :D_MODEL]
        g2 = bb[6:7, :D_MODEL]
        be2 = bb[7:8, :D_MODEL]

        # --- self attention: combined QKV projection, one matmul over all tokens ---
        qkv = jnp.dot(x, wqkv, preferred_element_type=jnp.float32) + bqkv  # (BS, 3D)
        q = qkv[:, :D_MODEL] * scale
        k = qkv[:, D_MODEL:2 * D_MODEL]
        v = qkv[:, 2 * D_MODEL:]

        # Head-batched tensors (B*H, S, HD) via static slices; no in-kernel .T.
        def heads(t):
            return jnp.stack(
                [t[b * SEQ:(b + 1) * SEQ, h * HEAD_DIM:(h + 1) * HEAD_DIM]
                 for b in range(BATCH) for h in range(NUM_HEADS)], axis=0)

        qh = heads(q)
        kh = heads(k)
        vh = heads(v)

        # scores: one batched dot over (batch, head); contract last dims (no kh.T)
        s = lax.dot_general(qh, kh, (((2,), (2,)), ((0,), (0,))),
                            preferred_element_type=jnp.float32)            # (BH, S, S)
        s = s - jnp.max(s, axis=-1, keepdims=True)
        p = jnp.exp(s)
        p = p * pl.reciprocal(jnp.sum(p, axis=-1, keepdims=True), approx=True)
        ctx = lax.dot_general(p, vh, (((2,), (1,)), ((0,), (0,))),
                              preferred_element_type=jnp.float32)          # (BH, S, HD)

        # re-pack heads -> (BS, D), then ONE out-projection matmul
        attn = jnp.concatenate(
            [jnp.concatenate([ctx[b * NUM_HEADS + h] for h in range(NUM_HEADS)],
                             axis=-1)
             for b in range(BATCH)], axis=0)                               # (BS, D)
        attn = jnp.dot(attn, wo, preferred_element_type=jnp.float32) + bo

        # --- residual + LayerNorm1 (post-norm, norm_first=False default) ---
        h1 = x + attn
        mu = jnp.mean(h1, axis=-1, keepdims=True)
        var = jnp.mean((h1 - mu) ** 2, axis=-1, keepdims=True)
        h1 = (h1 - mu) * lax.rsqrt(var + LN_EPS) * g1 + be1

        # --- feed forward (ReLU activation, PyTorch default) ---
        f = jnp.dot(h1, w1, preferred_element_type=jnp.float32) + bf1
        f = jnp.maximum(f, 0.0)
        f = jnp.dot(f, w2, preferred_element_type=jnp.float32) + bf2

        # --- residual + LayerNorm2 ---
        h2 = h1 + f
        mu2 = jnp.mean(h2, axis=-1, keepdims=True)
        var2 = jnp.mean((h2 - mu2) ** 2, axis=-1, keepdims=True)
        x = (h2 - mu2) * lax.rsqrt(var2 + LN_EPS) * g2 + be2

    o_ref[...] = x


def encoder_stack(x_flat, params):
    # Single pallas_call, single grid step: all layers + batches fused, the
    # inter-layer activation stays resident in VMEM.
    ins = [x_flat, params["wqkv"], params["wo"], params["w1"], params["w2"],
           params["bias"]]

    def full_spec(a):
        nd = a.ndim
        return pl.BlockSpec(a.shape, lambda i, _nd=nd: (0,) * _nd)

    return pl.pallas_call(
        encoder_stack_kernel,
        out_shape=jax.ShapeDtypeStruct(x_flat.shape, jnp.float32),
        grid=(1,),
        in_specs=[full_spec(a) for a in ins],
        out_specs=full_spec(x_flat),
        compiler_params=pltpu.CompilerParams(dimension_semantics=("arbitrary",)),
    )(*ins)


def positional_encoding(seq, d):
    pos = jnp.arange(seq, dtype=jnp.float32)[:, None]
    div = jnp.exp(jnp.arange(0, d, 2, dtype=jnp.float32) * (-math.log(10000.0) / d))
    pe = jnp.zeros((seq, d), jnp.float32)
    pe = pe.at[:, 0::2].set(jnp.sin(pos * div))
    pe = pe.at[:, 1::2].set(jnp.cos(pos * div))
    return pe


def init_params(key):
    keys = jax.random.split(key, 1 + NUM_LAYERS)
    emb = jax.random.normal(keys[0], (VOCAB, D_MODEL), jnp.float32)

    def lin_w(kk, out_f, in_f):
        bound = 1.0 / math.sqrt(in_f)
        return jax.random.uniform(kk, (out_f, in_f), jnp.float32, -bound, bound)

    def lin_b(kk, out_f, in_f):
        bound = 1.0 / math.sqrt(in_f)  # PyTorch nn.Linear bias bound uses in_features
        return jax.random.uniform(kk, (out_f,), jnp.float32, -bound, bound)

    def pad_row(v):
        return jnp.zeros((BIAS_LANES,), jnp.float32).at[:v.shape[0]].set(v)

    wqkv_l, wo_l, w1_l, w2_l, bias_l = [], [], [], [], []
    for l in range(NUM_LAYERS):
        k = jax.random.split(keys[1 + l], 6)
        wqkv = lin_w(k[0], 3 * D_MODEL, D_MODEL)   # PyTorch layout (out, in)
        wo = lin_w(k[1], D_MODEL, D_MODEL)
        w1 = lin_w(k[2], D_FF, D_MODEL)
        w2 = lin_w(k[3], D_MODEL, D_FF)
        bqkv = jnp.zeros((3 * D_MODEL,), jnp.float32)   # MHA in_proj bias zero-init
        bo = jnp.zeros((D_MODEL,), jnp.float32)         # MHA out_proj bias zero-init
        bf1 = lin_b(k[4], D_FF, D_MODEL)
        bf2 = lin_b(k[5], D_MODEL, D_FF)
        g1 = jnp.ones((D_MODEL,), jnp.float32)
        be1 = jnp.zeros((D_MODEL,), jnp.float32)
        g2 = jnp.ones((D_MODEL,), jnp.float32)
        be2 = jnp.zeros((D_MODEL,), jnp.float32)

        # Pre-transpose once at init: kernel computes x @ W directly.
        wqkv_l.append(wqkv.T)   # (D, 3D)
        wo_l.append(wo.T)       # (D, D)
        w1_l.append(w1.T)       # (D, D_FF)
        w2_l.append(w2.T)       # (D_FF, D)

        # Pack the 8 small bias/gain vectors into one (8, 128) slab per layer.
        bias_l.append(jnp.stack(
            [pad_row(bqkv), pad_row(bo), pad_row(g1), pad_row(be1),
             pad_row(bf1), pad_row(bf2), pad_row(g2), pad_row(be2)], axis=0))

    params = dict(
        wqkv=jnp.stack(wqkv_l),   # (L, D, 3D)
        wo=jnp.stack(wo_l),       # (L, D, D)
        w1=jnp.stack(w1_l),       # (L, D, D_FF)
        w2=jnp.stack(w2_l),       # (L, D_FF, D)
        bias=jnp.stack(bias_l),   # (L, 8, 128)
    )
    return emb, params


def transformer_encoder(src, emb, params):
    # Glue: embedding gather, sqrt(d_model) scale, positional encoding.
    B, S = src.shape
    x = emb[src] * math.sqrt(D_MODEL)
    x = x + positional_encoding(S, D_MODEL)[None]
    # Hot path: the whole encoder stack runs as ONE Pallas kernel.
    x_flat = x.reshape(B * S, D_MODEL)
    out = encoder_stack(x_flat, params)
    return out.reshape(B, S, D_MODEL)


if __name__ == "__main__":
    key = jax.random.PRNGKey(0)
    k_src, k_param = jax.random.split(key)
    src = jax.random.randint(k_src, (BATCH, SEQ), 0, VOCAB, dtype=jnp.int32)
    emb, params = init_params(k_param)

    out = transformer_encoder(src, emb, params)
    out = jax.block_until_ready(out)
    assert out.shape == (BATCH, SEQ, D_MODEL)
    assert bool(jnp.all(jnp.isfinite(out)))
    print("KERNEL_OK")
</pallas_src>

<mosaic_0001>
module attributes {stable_mosaic.version = 11 : i64} {
  func.func @encoder_stack_kernel(%arg0: i32, %arg1: memref<16x32xf32, #tpu.memory_space<vmem>>, %arg2: memref<2x32x96xf32, #tpu.memory_space<vmem>>, %arg3: memref<2x32x32xf32, #tpu.memory_space<vmem>>, %arg4: memref<2x32x64xf32, #tpu.memory_space<vmem>>, %arg5: memref<2x64x32xf32, #tpu.memory_space<vmem>>, %arg6: memref<2x8x128xf32, #tpu.memory_space<vmem>>, %arg7: memref<16x32xf32, #tpu.memory_space<vmem>>) attributes {dimension_semantics = [#tpu.dimension_semantics<arbitrary>], iteration_bounds = array<i64: 1>, scalar_prefetch = 0 : i64, scratch_operands = 0 : i64, tpu.core_type = #tpu.core_type<tc>, window_params = [{pipeline_mode = #tpu.pipeline_mode<synchronous>, transform_indices = @transform_0, window_bounds = array<i64: 16, 32>}, {pipeline_mode = #tpu.pipeline_mode<synchronous>, transform_indices = @transform_1, window_bounds = array<i64: 2, 32, 96>}, {pipeline_mode = #tpu.pipeline_mode<synchronous>, transform_indices = @transform_2, window_bounds = array<i64: 2, 32, 32>}, {pipeline_mode = #tpu.pipeline_mode<synchronous>, transform_indices = @transform_3, window_bounds = array<i64: 2, 32, 64>}, {pipeline_mode = #tpu.pipeline_mode<synchronous>, transform_indices = @transform_4, window_bounds = array<i64: 2, 64, 32>}, {pipeline_mode = #tpu.pipeline_mode<synchronous>, transform_indices = @transform_5, window_bounds = array<i64: 2, 8, 128>}, {pipeline_mode = #tpu.pipeline_mode<synchronous>, transform_indices = @transform_6, window_bounds = array<i64: 16, 32>}]} {
    %c0 = arith.constant 0 : index
    %c0_0 = arith.constant 0 : index
    %0 = vector.load %arg1[%c0, %c0_0] : memref<16x32xf32, #tpu.memory_space<vmem>>, vector<16x32xf32>
    %c0_1 = arith.constant 0 : index
    %c0_2 = arith.constant 0 : index
    %c0_3 = arith.constant 0 : index
    %1 = vector.load %arg2[%c0_1, %c0_2, %c0_3] : memref<2x32x96xf32, #tpu.memory_space<vmem>>, vector<1x32x96xf32>
    %2 = vector.shape_cast %1 : vector<1x32x96xf32> to vector<32x96xf32>
    %c0_4 = arith.constant 0 : index
    %c0_5 = arith.constant 0 : index
    %c0_6 = arith.constant 0 : index
    %3 = vector.load %arg3[%c0_4, %c0_5, %c0_6] : memref<2x32x32xf32, #tpu.memory_space<vmem>>, vector<1x32x32xf32>
    %4 = vector.shape_cast %3 : vector<1x32x32xf32> to vector<32x32xf32>
    %c0_7 = arith.constant 0 : index
    %c0_8 = arith.constant 0 : index
    %c0_9 = arith.constant 0 : index
    %5 = vector.load %arg4[%c0_7, %c0_8, %c0_9] : memref<2x32x64xf32, #tpu.memory_space<vmem>>, vector<1x32x64xf32>
    %6 = vector.shape_cast %5 : vector<1x32x64xf32> to vector<32x64xf32>
    %c0_10 = arith.constant 0 : index
    %c0_11 = arith.constant 0 : index
    %c0_12 = arith.constant 0 : index
    %7 = vector.load %arg5[%c0_10, %c0_11, %c0_12] : memref<2x64x32xf32, #tpu.memory_space<vmem>>, vector<1x64x32xf32>
    %8 = vector.shape_cast %7 : vector<1x64x32xf32> to vector<64x32xf32>
    %c0_13 = arith.constant 0 : index
    %c0_14 = arith.constant 0 : index
    %c0_15 = arith.constant 0 : index
    %9 = vector.load %arg6[%c0_13, %c0_14, %c0_15] : memref<2x8x128xf32, #tpu.memory_space<vmem>>, vector<1x8x128xf32>
    %10 = vector.shape_cast %9 : vector<1x8x128xf32> to vector<8x128xf32>
    %11 = vector.extract_strided_slice %10 {offsets = [0, 0], sizes = [1, 96], strides = [1, 1]} : vector<8x128xf32> to vector<1x96xf32>
    %12 = vector.extract_strided_slice %10 {offsets = [1, 0], sizes = [1, 32], strides = [1, 1]} : vector<8x128xf32> to vector<1x32xf32>
    %13 = vector.extract_strided_slice %10 {offsets = [2, 0], sizes = [1, 32], strides = [1, 1]} : vector<8x128xf32> to vector<1x32xf32>
    %14 = vector.extract_strided_slice %10 {offsets = [3, 0], sizes = [1, 32], strides = [1, 1]} : vector<8x128xf32> to vector<1x32xf32>
    %15 = vector.extract_strided_slice %10 {offsets = [4, 0], sizes = [1, 64], strides = [1, 1]} : vector<8x128xf32> to vector<1x64xf32>
    %16 = vector.extract_strided_slice %10 {offsets = [5, 0], sizes = [1, 32], strides = [1, 1]} : vector<8x128xf32> to vector<1x32xf32>
    %17 = vector.extract_strided_slice %10 {offsets = [6, 0], sizes = [1, 32], strides = [1, 1]} : vector<8x128xf32> to vector<1x32xf32>
    %18 = vector.extract_strided_slice %10 {offsets = [7, 0], sizes = [1, 32], strides = [1, 1]} : vector<8x128xf32> to vector<1x32xf32>
    %cst = arith.constant dense<0.000000e+00> : vector<16x96xf32>
    %19 = tpu.matmul %0, %2, %cst {dimension_numbers = #tpu.dot_dimension_numbers<[1], [0], [0], [1], [0, 0, 1, 1], [], []>} : vector<16x32xf32>, vector<32x96xf32>, vector<16x96xf32> -> vector<16x96xf32>
    %20 = vector.broadcast %11 : vector<1x96xf32> to vector<16x96xf32>
    %21 = arith.addf %19, %20 : vector<16x96xf32>
    %22 = vector.extract_strided_slice %21 {offsets = [0, 0], sizes = [16, 32], strides = [1, 1]} : vector<16x96xf32> to vector<16x32xf32>
    %cst_16 = arith.constant 0.353553385 : f32
    %23 = vector.broadcast %cst_16 : f32 to vector<16x32xf32>
    %24 = arith.mulf %22, %23 : vector<16x32xf32>
    %25 = vector.extract_strided_slice %21 {offsets = [0, 32], sizes = [16, 32], strides = [1, 1]} : vector<16x96xf32> to vector<16x32xf32>
    %26 = vector.extract_strided_slice %21 {offsets = [0, 64], sizes = [16, 32], strides = [1, 1]} : vector<16x96xf32> to vector<16x32xf32>
    %27 = vector.extract_strided_slice %24 {offsets = [0, 0], sizes = [8, 8], strides = [1, 1]} : vector<16x32xf32> to vector<8x8xf32>
    %28 = vector.extract_strided_slice %24 {offsets = [0, 8], sizes = [8, 8], strides = [1, 1]} : vector<16x32xf32> to vector<8x8xf32>
    %29 = vector.extract_strided_slice %24 {offsets = [0, 16], sizes = [8, 8], strides = [1, 1]} : vector<16x32xf32> to vector<8x8xf32>
    %30 = vector.extract_strided_slice %24 {offsets = [0, 24], sizes = [8, 8], strides = [1, 1]} : vector<16x32xf32> to vector<8x8xf32>
    %31 = vector.extract_strided_slice %24 {offsets = [8, 0], sizes = [8, 8], strides = [1, 1]} : vector<16x32xf32> to vector<8x8xf32>
    %32 = vector.extract_strided_slice %24 {offsets = [8, 8], sizes = [8, 8], strides = [1, 1]} : vector<16x32xf32> to vector<8x8xf32>
    %33 = vector.extract_strided_slice %24 {offsets = [8, 16], sizes = [8, 8], strides = [1, 1]} : vector<16x32xf32> to vector<8x8xf32>
    %34 = vector.extract_strided_slice %24 {offsets = [8, 24], sizes = [8, 8], strides = [1, 1]} : vector<16x32xf32> to vector<8x8xf32>
    %35 = vector.shape_cast %27 : vector<8x8xf32> to vector<1x8x8xf32>
    %36 = vector.shape_cast %28 : vector<8x8xf32> to vector<1x8x8xf32>
    %37 = vector.shape_cast %29 : vector<8x8xf32> to vector<1x8x8xf32>
    %38 = vector.shape_cast %30 : vector<8x8xf32> to vector<1x8x8xf32>
    %39 = vector.shape_cast %31 : vector<8x8xf32> to vector<1x8x8xf32>
    %40 = vector.shape_cast %32 : vector<8x8xf32> to vector<1x8x8xf32>
    %41 = vector.shape_cast %33 : vector<8x8xf32> to vector<1x8x8xf32>
    %42 = vector.shape_cast %34 : vector<8x8xf32> to vector<1x8x8xf32>
    %43 = tpu.concatenate %35, %36, %37, %38, %39, %40, %41, %42 in 0 : vector<1x8x8xf32>, vector<1x8x8xf32>, vector<1x8x8xf32>, vector<1x8x8xf32>, vector<1x8x8xf32>, vector<1x8x8xf32>, vector<1x8x8xf32>, vector<1x8x8xf32> -> vector<8x8x8xf32>
    %44 = vector.extract_strided_slice %25 {offsets = [0, 0], sizes = [8, 8], strides = [1, 1]} : vector<16x32xf32> to vector<8x8xf32>
    %45 = vector.extract_strided_slice %25 {offsets = [0, 8], sizes = [8, 8], strides = [1, 1]} : vector<16x32xf32> to vector<8x8xf32>
    %46 = vector.extract_strided_slice %25 {offsets = [0, 16], sizes = [8, 8], strides = [1, 1]} : vector<16x32xf32> to vector<8x8xf32>
    %47 = vector.extract_strided_slice %25 {offsets = [0, 24], sizes = [8, 8], strides = [1, 1]} : vector<16x32xf32> to vector<8x8xf32>
    %48 = vector.extract_strided_slice %25 {offsets = [8, 0], sizes = [8, 8], strides = [1, 1]} : vector<16x32xf32> to vector<8x8xf32>
    %49 = vector.extract_strided_slice %25 {offsets = [8, 8], sizes = [8, 8], strides = [1, 1]} : vector<16x32xf32> to vector<8x8xf32>
    %50 = vector.extract_strided_slice %25 {offsets = [8, 16], sizes = [8, 8], strides = [1, 1]} : vector<16x32xf32> to vector<8x8xf32>
    %51 = vector.extract_strided_slice %25 {offsets = [8, 24], sizes = [8, 8], strides = [1, 1]} : vector<16x32xf32> to vector<8x8xf32>
    %52 = vector.shape_cast %44 : vector<8x8xf32> to vector<1x8x8xf32>
    %53 = vector.shape_cast %45 : vector<8x8xf32> to vector<1x8x8xf32>
    %54 = vector.shape_cast %46 : vector<8x8xf32> to vector<1x8x8xf32>
    %55 = vector.shape_cast %47 : vector<8x8xf32> to vector<1x8x8xf32>
    %56 = vector.shape_cast %48 : vector<8x8xf32> to vector<1x8x8xf32>
    %57 = vector.shape_cast %49 : vector<8x8xf32> to vector<1x8x8xf32>
    %58 = vector.shape_cast %50 : vector<8x8xf32> to vector<1x8x8xf32>
    %59 = vector.shape_cast %51 : vector<8x8xf32> to vector<1x8x8xf32>
    %60 = tpu.concatenate %52, %53, %54, %55, %56, %57, %58, %59 in 0 : vector<1x8x8xf32>, vector<1x8x8xf32>, vector<1x8x8xf32>, vector<1x8x8xf32>, vector<1x8x8xf32>, vector<1x8x8xf32>, vector<1x8x8xf32>, vector<1x8x8xf32> -> vector<8x8x8xf32>
    %61 = vector.extract_strided_slice %26 {offsets = [0, 0], sizes = [8, 8], strides = [1, 1]} : vector<16x32xf32> to vector<8x8xf32>
    %62 = vector.extract_strided_slice %26 {offsets = [0, 8], sizes = [8, 8], strides = [1, 1]} : vector<16x32xf32> to vector<8x8xf32>
    %63 = vector.extract_strided_slice %26 {offsets = [0, 16], sizes = [8, 8], strides = [1, 1]} : vector<16x32xf32> to vector<8x8xf32>
    %64 = vector.extract_strided_slice %26 {offsets = [0, 24], sizes = [8, 8], strides = [1, 1]} : vector<16x32xf32> to vector<8x8xf32>
    %65 = vector.extract_strided_slice %26 {offsets = [8, 0], sizes = [8, 8], strides = [1, 1]} : vector<16x32xf32> to vector<8x8xf32>
    %66 = vector.extract_strided_slice %26 {offsets = [8, 8], sizes = [8, 8], strides = [1, 1]} : vector<16x32xf32> to vector<8x8xf32>
    %67 = vector.extract_strided_slice %26 {offsets = [8, 16], sizes = [8, 8], strides = [1, 1]} : vector<16x32xf32> to vector<8x8xf32>
    %68 = vector.extract_strided_slice %26 {offsets = [8, 24], sizes = [8, 8], strides = [1, 1]} : vector<16x32xf32> to vector<8x8xf32>
    %69 = vector.shape_cast %61 : vector<8x8xf32> to vector<1x8x8xf32>
    %70 = vector.shape_cast %62 : vector<8x8xf32> to vector<1x8x8xf32>
    %71 = vector.shape_cast %63 : vector<8x8xf32> to vector<1x8x8xf32>
    %72 = vector.shape_cast %64 : vector<8x8xf32> to vector<1x8x8xf32>
    %73 = vector.shape_cast %65 : vector<8x8xf32> to vector<1x8x8xf32>
    %74 = vector.shape_cast %66 : vector<8x8xf32> to vector<1x8x8xf32>
    %75 = vector.shape_cast %67 : vector<8x8xf32> to vector<1x8x8xf32>
    %76 = vector.shape_cast %68 : vector<8x8xf32> to vector<1x8x8xf32>
    %77 = tpu.concatenate %69, %70, %71, %72, %73, %74, %75, %76 in 0 : vector<1x8x8xf32>, vector<1x8x8xf32>, vector<1x8x8xf32>, vector<1x8x8xf32>, vector<1x8x8xf32>, vector<1x8x8xf32>, vector<1x8x8xf32>, vector<1x8x8xf32> -> vector<8x8x8xf32>
    %cst_17 = arith.constant dense<0.000000e+00> : vector<8x8x8xf32>
    %78 = tpu.matmul %43, %60, %cst_17 {dimension_numbers = #tpu.dot_dimension_numbers<[2], [2], [1], [1], [0, 0, 0, 1, 1, 1], [0], [0]>} : vector<8x8x8xf32>, vector<8x8x8xf32>, vector<8x8x8xf32> -> vector<8x8x8xf32>
    %cst_18 = arith.constant dense<0xFF800000> : vector<8x8xf32>
    %79 = vector.multi_reduction <maximumf>, %78, %cst_18 [2] : vector<8x8x8xf32> to vector<8x8xf32>
    %80 = vector.shape_cast %79 : vector<8x8xf32> to vector<8x8x1xf32>
    %81 = vector.broadcast %80 : vector<8x8x1xf32> to vector<8x8x8xf32>
    %82 = arith.subf %78, %81 : vector<8x8x8xf32>
    %83 = math.exp %82 : vector<8x8x8xf32>
    %cst_19 = arith.constant dense<0.000000e+00> : vector<8x8xf32>
    %84 = vector.multi_reduction <add>, %83, %cst_19 [2] : vector<8x8x8xf32> to vector<8x8xf32>
    %85 = vector.shape_cast %84 : vector<8x8xf32> to vector<8x8x1xf32>
    %86 = tpu.reciprocal %85 {approx = true} : vector<8x8x1xf32> -> vector<8x8x1xf32>
    %87 = vector.broadcast %86 : vector<8x8x1xf32> to vector<8x8x8xf32>
    %88 = arith.mulf %83, %87 : vector<8x8x8xf32>
    %cst_20 = arith.constant dense<0.000000e+00> : vector<8x8x8xf32>
    %89 = tpu.matmul %88, %77, %cst_20 {dimension_numbers = #tpu.dot_dimension_numbers<[2], [1], [1], [2], [0, 0, 0, 1, 1, 2], [0], [0]>} : vector<8x8x8xf32>, vector<8x8x8xf32>, vector<8x8x8xf32> -> vector<8x8x8xf32>
    %90 = vector.extract_strided_slice %89 {offsets = [0, 0, 0], sizes = [1, 8, 8], strides = [1, 1, 1]} : vector<8x8x8xf32> to vector<1x8x8xf32>
    %91 = vector.shape_cast %90 : vector<1x8x8xf32> to vector<8x8xf32>
    %92 = vector.extract_strided_slice %89 {offsets = [1, 0, 0], sizes = [1, 8, 8], strides = [1, 1, 1]} : vector<8x8x8xf32> to vector<1x8x8xf32>
    %93 = vector.shape_cast %92 : vector<1x8x8xf32> to vector<8x8xf32>
    %94 = vector.extract_strided_slice %89 {offsets = [2, 0, 0], sizes = [1, 8, 8], strides = [1, 1, 1]} : vector<8x8x8xf32> to vector<1x8x8xf32>
    %95 = vector.shape_cast %94 : vector<1x8x8xf32> to vector<8x8xf32>
    %96 = vector.extract_strided_slice %89 {offsets = [3, 0, 0], sizes = [1, 8, 8], strides = [1, 1, 1]} : vector<8x8x8xf32> to vector<1x8x8xf32>
    %97 = vector.shape_cast %96 : vector<1x8x8xf32> to vector<8x8xf32>
    %98 = tpu.concatenate %91, %93, %95, %97 in 1 : vector<8x8xf32>, vector<8x8xf32>, vector<8x8xf32>, vector<8x8xf32> -> vector<8x32xf32>
    %99 = vector.extract_strided_slice %89 {offsets = [4, 0, 0], sizes = [1, 8, 8], strides = [1, 1, 1]} : vector<8x8x8xf32> to vector<1x8x8xf32>
    %100 = vector.shape_cast %99 : vector<1x8x8xf32> to vector<8x8xf32>
    %101 = vector.extract_strided_slice %89 {offsets = [5, 0, 0], sizes = [1, 8, 8], strides = [1, 1, 1]} : vector<8x8x8xf32> to vector<1x8x8xf32>
    %102 = vector.shape_cast %101 : vector<1x8x8xf32> to vector<8x8xf32>
    %103 = vector.extract_strided_slice %89 {offsets = [6, 0, 0], sizes = [1, 8, 8], strides = [1, 1, 1]} : vector<8x8x8xf32> to vector<1x8x8xf32>
    %104 = vector.shape_cast %103 : vector<1x8x8xf32> to vector<8x8xf32>
    %105 = vector.extract_strided_slice %89 {offsets = [7, 0, 0], sizes = [1, 8, 8], strides = [1, 1, 1]} : vector<8x8x8xf32> to vector<1x8x8xf32>
    %106 = vector.shape_cast %105 : vector<1x8x8xf32> to vector<8x8xf32>
    %107 = tpu.concatenate %100, %102, %104, %106 in 1 : vector<8x8xf32>, vector<8x8xf32>, vector<8x8xf32>, vector<8x8xf32> -> vector<8x32xf32>
    %108 = tpu.concatenate %98, %107 in 0 : vector<8x32xf32>, vector<8x32xf32> -> vector<16x32xf32>
    %cst_21 = arith.constant dense<0.000000e+00> : vector<16x32xf32>
    %109 = tpu.matmul %108, %4, %cst_21 {dimension_numbers = #tpu.dot_dimension_numbers<[1], [0], [0], [1], [0, 0, 1, 1], [], []>} : vector<16x32xf32>, vector<32x32xf32>, vector<16x32xf32> -> vector<16x32xf32>
    %110 = vector.broadcast %12 : vector<1x32xf32> to vector<16x32xf32>
    %111 = arith.addf %109, %110 : vector<16x32xf32>
    %112 = arith.addf %0, %111 : vector<16x32xf32>
    %cst_22 = arith.constant dense<0.000000e+00> : vector<16xf32>
    %113 = vector.multi_reduction <add>, %112, %cst_22 [1] : vector<16x32xf32> to vector<16xf32>
    %114 = vector.shape_cast %113 : vector<16xf32> to vector<16x1xf32>
    %cst_23 = arith.constant 3.200000e+01 : f32
    %115 = vector.broadcast %cst_23 : f32 to vector<16x1xf32>
    %116 = arith.divf %114, %115 : vector<16x1xf32>
    %117 = vector.broadcast %116 : vector<16x1xf32> to vector<16x32xf32>
    %118 = arith.subf %112, %117 : vector<16x32xf32>
    %119 = arith.mulf %118, %118 : vector<16x32xf32>
    %cst_24 = arith.constant dense<0.000000e+00> : vector<16xf32>
    %120 = vector.multi_reduction <add>, %119, %cst_24 [1] : vector<16x32xf32> to vector<16xf32>
    %121 = vector.shape_cast %120 : vector<16xf32> to vector<16x1xf32>
    %cst_25 = arith.constant 3.200000e+01 : f32
    %122 = vector.broadcast %cst_25 : f32 to vector<16x1xf32>
    %123 = arith.divf %121, %122 : vector<16x1xf32>
    %124 = vector.broadcast %116 : vector<16x1xf32> to vector<16x32xf32>
    %125 = arith.subf %112, %124 : vector<16x32xf32>
    %cst_26 = arith.constant 9.99999974E-6 : f32
    %126 = vector.broadcast %cst_26 : f32 to vector<16x1xf32>
    %127 = arith.addf %123, %126 : vector<16x1xf32>
    %128 = math.rsqrt %127 : vector<16x1xf32>
    %129 = vector.broadcast %128 : vector<16x1xf32> to vector<16x32xf32>
    %130 = arith.mulf %125, %129 : vector<16x32xf32>
    %131 = vector.broadcast %13 : vector<1x32xf32> to vector<16x32xf32>
    %132 = arith.mulf %130, %131 : vector<16x32xf32>
    %133 = vector.broadcast %14 : vector<1x32xf32> to vector<16x32xf32>
    %134 = arith.addf %132, %133 : vector<16x32xf32>
    %cst_27 = arith.constant dense<0.000000e+00> : vector<16x64xf32>
    %135 = tpu.matmul %134, %6, %cst_27 {dimension_numbers = #tpu.dot_dimension_numbers<[1], [0], [0], [1], [0, 0, 1, 1], [], []>} : vector<16x32xf32>, vector<32x64xf32>, vector<16x64xf32> -> vector<16x64xf32>
    %136 = vector.broadcast %15 : vector<1x64xf32> to vector<16x64xf32>
    %137 = arith.addf %135, %136 : vector<16x64xf32>
    %cst_28 = arith.constant 0.000000e+00 : f32
    %138 = vector.broadcast %cst_28 : f32 to vector<16x64xf32>
    %139 = arith.maximumf %137, %138 : vector<16x64xf32>
    %cst_29 = arith.constant dense<0.000000e+00> : vector<16x32xf32>
    %140 = tpu.matmul %139, %8, %cst_29 {dimension_numbers = #tpu.dot_dimension_numbers<[1], [0], [0], [1], [0, 0, 1, 1], [], []>} : vector<16x64xf32>, vector<64x32xf32>, vector<16x32xf32> -> vector<16x32xf32>
    %141 = vector.broadcast %16 : vector<1x32xf32> to vector<16x32xf32>
    %142 = arith.addf %140, %141 : vector<16x32xf32>
    %143 = arith.addf %134, %142 : vector<16x32xf32>
    %cst_30 = arith.constant dense<0.000000e+00> : vector<16xf32>
    %144 = vector.multi_reduction <add>, %143, %cst_30 [1] : vector<16x32xf32> to vector<16xf32>
    %145 = vector.shape_cast %144 : vector<16xf32> to vector<16x1xf32>
    %cst_31 = arith.constant 3.200000e+01 : f32
    %146 = vector.broadcast %cst_31 : f32 to vector<16x1xf32>
    %147 = arith.divf %145, %146 : vector<16x1xf32>
    %148 = vector.broadcast %147 : vector<16x1xf32> to vector<16x32xf32>
    %149 = arith.subf %143, %148 : vector<16x32xf32>
    %150 = arith.mulf %149, %149 : vector<16x32xf32>
    %cst_32 = arith.constant dense<0.000000e+00> : vector<16xf32>
    %151 = vector.multi_reduction <add>, %150, %cst_32 [1] : vector<16x32xf32> to vector<16xf32>
    %152 = vector.shape_cast %151 : vector<16xf32> to vector<16x1xf32>
    %cst_33 = arith.constant 3.200000e+01 : f32
    %153 = vector.broadcast %cst_33 : f32 to vector<16x1xf32>
    %154 = arith.divf %152, %153 : vector<16x1xf32>
    %155 = vector.broadcast %147 : vector<16x1xf32> to vector<16x32xf32>
    %156 = arith.subf %143, %155 : vector<16x32xf32>
    %cst_34 = arith.constant 9.99999974E-6 : f32
    %157 = vector.broadcast %cst_34 : f32 to vector<16x1xf32>
    %158 = arith.addf %154, %157 : vector<16x1xf32>
    %159 = math.rsqrt %158 : vector<16x1xf32>
    %160 = vector.broadcast %159 : vector<16x1xf32> to vector<16x32xf32>
    %161 = arith.mulf %156, %160 : vector<16x32xf32>
    %162 = vector.broadcast %17 : vector<1x32xf32> to vector<16x32xf32>
    %163 = arith.mulf %161, %162 : vector<16x32xf32>
    %164 = vector.broadcast %18 : vector<1x32xf32> to vector<16x32xf32>
    %165 = arith.addf %163, %164 : vector<16x32xf32>
    %c1 = arith.constant 1 : index
    %c0_35 = arith.constant 0 : index
    %c0_36 = arith.constant 0 : index
    %166 = vector.load %arg2[%c1, %c0_35, %c0_36] : memref<2x32x96xf32, #tpu.memory_space<vmem>>, vector<1x32x96xf32>
    %167 = vector.shape_cast %166 : vector<1x32x96xf32> to vector<32x96xf32>
    %c1_37 = arith.constant 1 : index
    %c0_38 = arith.constant 0 : index
    %c0_39 = arith.constant 0 : index
    %168 = vector.load %arg3[%c1_37, %c0_38, %c0_39] : memref<2x32x32xf32, #tpu.memory_space<vmem>>, vector<1x32x32xf32>
    %169 = vector.shape_cast %168 : vector<1x32x32xf32> to vector<32x32xf32>
    %c1_40 = arith.constant 1 : index
    %c0_41 = arith.constant 0 : index
    %c0_42 = arith.constant 0 : index
    %170 = vector.load %arg4[%c1_40, %c0_41, %c0_42] : memref<2x32x64xf32, #tpu.memory_space<vmem>>, vector<1x32x64xf32>
    %171 = vector.shape_cast %170 : vector<1x32x64xf32> to vector<32x64xf32>
    %c1_43 = arith.constant 1 : index
    %c0_44 = arith.constant 0 : index
    %c0_45 = arith.constant 0 : index
    %172 = vector.load %arg5[%c1_43, %c0_44, %c0_45] : memref<2x64x32xf32, #tpu.memory_space<vmem>>, vector<1x64x32xf32>
    %173 = vector.shape_cast %172 : vector<1x64x32xf32> to vector<64x32xf32>
    %c1_46 = arith.constant 1 : index
    %c0_47 = arith.constant 0 : index
    %c0_48 = arith.constant 0 : index
    %174 = vector.load %arg6[%c1_46, %c0_47, %c0_48] : memref<2x8x128xf32, #tpu.memory_space<vmem>>, vector<1x8x128xf32>
    %175 = vector.shape_cast %174 : vector<1x8x128xf32> to vector<8x128xf32>
    %176 = vector.extract_strided_slice %175 {offsets = [0, 0], sizes = [1, 96], strides = [1, 1]} : vector<8x128xf32> to vector<1x96xf32>
    %177 = vector.extract_strided_slice %175 {offsets = [1, 0], sizes = [1, 32], strides = [1, 1]} : vector<8x128xf32> to vector<1x32xf32>
    %178 = vector.extract_strided_slice %175 {offsets = [2, 0], sizes = [1, 32], strides = [1, 1]} : vector<8x128xf32> to vector<1x32xf32>
    %179 = vector.extract_strided_slice %175 {offsets = [3, 0], sizes = [1, 32], strides = [1, 1]} : vector<8x128xf32> to vector<1x32xf32>
    %180 = vector.extract_strided_slice %175 {offsets = [4, 0], sizes = [1, 64], strides = [1, 1]} : vector<8x128xf32> to vector<1x64xf32>
    %181 = vector.extract_strided_slice %175 {offsets = [5, 0], sizes = [1, 32], strides = [1, 1]} : vector<8x128xf32> to vector<1x32xf32>
    %182 = vector.extract_strided_slice %175 {offsets = [6, 0], sizes = [1, 32], strides = [1, 1]} : vector<8x128xf32> to vector<1x32xf32>
    %183 = vector.extract_strided_slice %175 {offsets = [7, 0], sizes = [1, 32], strides = [1, 1]} : vector<8x128xf32> to vector<1x32xf32>
    %cst_49 = arith.constant dense<0.000000e+00> : vector<16x96xf32>
    %184 = tpu.matmul %165, %167, %cst_49 {dimension_numbers = #tpu.dot_dimension_numbers<[1], [0], [0], [1], [0, 0, 1, 1], [], []>} : vector<16x32xf32>, vector<32x96xf32>, vector<16x96xf32> -> vector<16x96xf32>
    %185 = vector.broadcast %176 : vector<1x96xf32> to vector<16x96xf32>
    %186 = arith.addf %184, %185 : vector<16x96xf32>
    %187 = vector.extract_strided_slice %186 {offsets = [0, 0], sizes = [16, 32], strides = [1, 1]} : vector<16x96xf32> to vector<16x32xf32>
    %cst_50 = arith.constant 0.353553385 : f32
    %188 = vector.broadcast %cst_50 : f32 to vector<16x32xf32>
    %189 = arith.mulf %187, %188 : vector<16x32xf32>
    %190 = vector.extract_strided_slice %186 {offsets = [0, 32], sizes = [16, 32], strides = [1, 1]} : vector<16x96xf32> to vector<16x32xf32>
    %191 = vector.extract_strided_slice %186 {offsets = [0, 64], sizes = [16, 32], strides = [1, 1]} : vector<16x96xf32> to vector<16x32xf32>
    %192 = vector.extract_strided_slice %189 {offsets = [0, 0], sizes = [8, 8], strides = [1, 1]} : vector<16x32xf32> to vector<8x8xf32>
    %193 = vector.extract_strided_slice %189 {offsets = [0, 8], sizes = [8, 8], strides = [1, 1]} : vector<16x32xf32> to vector<8x8xf32>
    %194 = vector.extract_strided_slice %189 {offsets = [0, 16], sizes = [8, 8], strides = [1, 1]} : vector<16x32xf32> to vector<8x8xf32>
    %195 = vector.extract_strided_slice %189 {offsets = [0, 24], sizes = [8, 8], strides = [1, 1]} : vector<16x32xf32> to vector<8x8xf32>
    %196 = vector.extract_strided_slice %189 {offsets = [8, 0], sizes = [8, 8], strides = [1, 1]} : vector<16x32xf32> to vector<8x8xf32>
    %197 = vector.extract_strided_slice %189 {offsets = [8, 8], sizes = [8, 8], strides = [1, 1]} : vector<16x32xf32> to vector<8x8xf32>
    %198 = vector.extract_strided_slice %189 {offsets = [8, 16], sizes = [8, 8], strides = [1, 1]} : vector<16x32xf32> to vector<8x8xf32>
    %199 = vector.extract_strided_slice %189 {offsets = [8, 24], sizes = [8, 8], strides = [1, 1]} : vector<16x32xf32> to vector<8x8xf32>
    %200 = vector.shape_cast %192 : vector<8x8xf32> to vector<1x8x8xf32>
    %201 = vector.shape_cast %193 : vector<8x8xf32> to vector<1x8x8xf32>
    %202 = vector.shape_cast %194 : vector<8x8xf32> to vector<1x8x8xf32>
    %203 = vector.shape_cast %195 : vector<8x8xf32> to vector<1x8x8xf32>
    %204 = vector.shape_cast %196 : vector<8x8xf32> to vector<1x8x8xf32>
    %205 = vector.shape_cast %197 : vector<8x8xf32> to vector<1x8x8xf32>
    %206 = vector.shape_cast %198 : vector<8x8xf32> to vector<1x8x8xf32>
    %207 = vector.shape_cast %199 : vector<8x8xf32> to vector<1x8x8xf32>
    %208 = tpu.concatenate %200, %201, %202, %203, %204, %205, %206, %207 in 0 : vector<1x8x8xf32>, vector<1x8x8xf32>, vector<1x8x8xf32>, vector<1x8x8xf32>, vector<1x8x8xf32>, vector<1x8x8xf32>, vector<1x8x8xf32>, vector<1x8x8xf32> -> vector<8x8x8xf32>
    %209 = vector.extract_strided_slice %190 {offsets = [0, 0], sizes = [8, 8], strides = [1, 1]} : vector<16x32xf32> to vector<8x8xf32>
    %210 = vector.extract_strided_slice %190 {offsets = [0, 8], sizes = [8, 8], strides = [1, 1]} : vector<16x32xf32> to vector<8x8xf32>
    %211 = vector.extract_strided_slice %190 {offsets = [0, 16], sizes = [8, 8], strides = [1, 1]} : vector<16x32xf32> to vector<8x8xf32>
    %212 = vector.extract_strided_slice %190 {offsets = [0, 24], sizes = [8, 8], strides = [1, 1]} : vector<16x32xf32> to vector<8x8xf32>
    %213 = vector.extract_strided_slice %190 {offsets = [8, 0], sizes = [8, 8], strides = [1, 1]} : vector<16x32xf32> to vector<8x8xf32>
    %214 = vector.extract_strided_slice %190 {offsets = [8, 8], sizes = [8, 8], strides = [1, 1]} : vector<16x32xf32> to vector<8x8xf32>
    %215 = vector.extract_strided_slice %190 {offsets = [8, 16], sizes = [8, 8], strides = [1, 1]} : vector<16x32xf32> to vector<8x8xf32>
    %216 = vector.extract_strided_slice %190 {offsets = [8, 24], sizes = [8, 8], strides = [1, 1]} : vector<16x32xf32> to vector<8x8xf32>
    %217 = vector.shape_cast %209 : vector<8x8xf32> to vector<1x8x8xf32>
    %218 = vector.shape_cast %210 : vector<8x8xf32> to vector<1x8x8xf32>
    %219 = vector.shape_cast %211 : vector<8x8xf32> to vector<1x8x8xf32>
    %220 = vector.shape_cast %212 : vector<8x8xf32> to vector<1x8x8xf32>
    %221 = vector.shape_cast %213 : vector<8x8xf32> to vector<1x8x8xf32>
    %222 = vector.shape_cast %214 : vector<8x8xf32> to vector<1x8x8xf32>
    %223 = vector.shape_cast %215 : vector<8x8xf32> to vector<1x8x8xf32>
    %224 = vector.shape_cast %216 : vector<8x8xf32> to vector<1x8x8xf32>
    %225 = tpu.concatenate %217, %218, %219, %220, %221, %222, %223, %224 in 0 : vector<1x8x8xf32>, vector<1x8x8xf32>, vector<1x8x8xf32>, vector<1x8x8xf32>, vector<1x8x8xf32>, vector<1x8x8xf32>, vector<1x8x8xf32>, vector<1x8x8xf32> -> vector<8x8x8xf32>
    %226 = vector.extract_strided_slice %191 {offsets = [0, 0], sizes = [8, 8], strides = [1, 1]} : vector<16x32xf32> to vector<8x8xf32>
    %227 = vector.extract_strided_slice %191 {offsets = [0, 8], sizes = [8, 8], strides = [1, 1]} : vector<16x32xf32> to vector<8x8xf32>
    %228 = vector.extract_strided_slice %191 {offsets = [0, 16], sizes = [8, 8], strides = [1, 1]} : vector<16x32xf32> to vector<8x8xf32>
    %229 = vector.extract_strided_slice %191 {offsets = [0, 24], sizes = [8, 8], strides = [1, 1]} : vector<16x32xf32> to vector<8x8xf32>
    %230 = vector.extract_strided_slice %191 {offsets = [8, 0], sizes = [8, 8], strides = [1, 1]} : vector<16x32xf32> to vector<8x8xf32>
    %231 = vector.extract_strided_slice %191 {offsets = [8, 8], sizes = [8, 8], strides = [1, 1]} : vector<16x32xf32> to vector<8x8xf32>
    %232 = vector.extract_strided_slice %191 {offsets = [8, 16], sizes = [8, 8], strides = [1, 1]} : vector<16x32xf32> to vector<8x8xf32>
    %233 = vector.extract_strided_slice %191 {offsets = [8, 24], sizes = [8, 8], strides = [1, 1]} : vector<16x32xf32> to vector<8x8xf32>
    %234 = vector.shape_cast %226 : vector<8x8xf32> to vector<1x8x8xf32>
    %235 = vector.shape_cast %227 : vector<8x8xf32> to vector<1x8x8xf32>
    %236 = vector.shape_cast %228 : vector<8x8xf32> to vector<1x8x8xf32>
    %237 = vector.shape_cast %229 : vector<8x8xf32> to vector<1x8x8xf32>
    %238 = vector.shape_cast %230 : vector<8x8xf32> to vector<1x8x8xf32>
    %239 = vector.shape_cast %231 : vector<8x8xf32> to vector<1x8x8xf32>
    %240 = vector.shape_cast %232 : vector<8x8xf32> to vector<1x8x8xf32>
    %241 = vector.shape_cast %233 : vector<8x8xf32> to vector<1x8x8xf32>
    %242 = tpu.concatenate %234, %235, %236, %237, %238, %239, %240, %241 in 0 : vector<1x8x8xf32>, vector<1x8x8xf32>, vector<1x8x8xf32>, vector<1x8x8xf32>, vector<1x8x8xf32>, vector<1x8x8xf32>, vector<1x8x8xf32>, vector<1x8x8xf32> -> vector<8x8x8xf32>
    %cst_51 = arith.constant dense<0.000000e+00> : vector<8x8x8xf32>
    %243 = tpu.matmul %208, %225, %cst_51 {dimension_numbers = #tpu.dot_dimension_numbers<[2], [2], [1], [1], [0, 0, 0, 1, 1, 1], [0], [0]>} : vector<8x8x8xf32>, vector<8x8x8xf32>, vector<8x8x8xf32> -> vector<8x8x8xf32>
    %cst_52 = arith.constant dense<0xFF800000> : vector<8x8xf32>
    %244 = vector.multi_reduction <maximumf>, %243, %cst_52 [2] : vector<8x8x8xf32> to vector<8x8xf32>
    %245 = vector.shape_cast %244 : vector<8x8xf32> to vector<8x8x1xf32>
    %246 = vector.broadcast %245 : vector<8x8x1xf32> to vector<8x8x8xf32>
    %247 = arith.subf %243, %246 : vector<8x8x8xf32>
    %248 = math.exp %247 : vector<8x8x8xf32>
    %cst_53 = arith.constant dense<0.000000e+00> : vector<8x8xf32>
    %249 = vector.multi_reduction <add>, %248, %cst_53 [2] : vector<8x8x8xf32> to vector<8x8xf32>
    %250 = vector.shape_cast %249 : vector<8x8xf32> to vector<8x8x1xf32>
    %251 = tpu.reciprocal %250 {approx = true} : vector<8x8x1xf32> -> vector<8x8x1xf32>
    %252 = vector.broadcast %251 : vector<8x8x1xf32> to vector<8x8x8xf32>
    %253 = arith.mulf %248, %252 : vector<8x8x8xf32>
    %cst_54 = arith.constant dense<0.000000e+00> : vector<8x8x8xf32>
    %254 = tpu.matmul %253, %242, %cst_54 {dimension_numbers = #tpu.dot_dimension_numbers<[2], [1], [1], [2], [0, 0, 0, 1, 1, 2], [0], [0]>} : vector<8x8x8xf32>, vector<8x8x8xf32>, vector<8x8x8xf32> -> vector<8x8x8xf32>
    %255 = vector.extract_strided_slice %254 {offsets = [0, 0, 0], sizes = [1, 8, 8], strides = [1, 1, 1]} : vector<8x8x8xf32> to vector<1x8x8xf32>
    %256 = vector.shape_cast %255 : vector<1x8x8xf32> to vector<8x8xf32>
    %257 = vector.extract_strided_slice %254 {offsets = [1, 0, 0], sizes = [1, 8, 8], strides = [1, 1, 1]} : vector<8x8x8xf32> to vector<1x8x8xf32>
    %258 = vector.shape_cast %257 : vector<1x8x8xf32> to vector<8x8xf32>
    %259 = vector.extract_strided_slice %254 {offsets = [2, 0, 0], sizes = [1, 8, 8], strides = [1, 1, 1]} : vector<8x8x8xf32> to vector<1x8x8xf32>
    %260 = vector.shape_cast %259 : vector<1x8x8xf32> to vector<8x8xf32>
    %261 = vector.extract_strided_slice %254 {offsets = [3, 0, 0], sizes = [1, 8, 8], strides = [1, 1, 1]} : vector<8x8x8xf32> to vector<1x8x8xf32>
    %262 = vector.shape_cast %261 : vector<1x8x8xf32> to vector<8x8xf32>
    %263 = tpu.concatenate %256, %258, %260, %262 in 1 : vector<8x8xf32>, vector<8x8xf32>, vector<8x8xf32>, vector<8x8xf32> -> vector<8x32xf32>
    %264 = vector.extract_strided_slice %254 {offsets = [4, 0, 0], sizes = [1, 8, 8], strides = [1, 1, 1]} : vector<8x8x8xf32> to vector<1x8x8xf32>
    %265 = vector.shape_cast %264 : vector<1x8x8xf32> to vector<8x8xf32>
    %266 = vector.extract_strided_slice %254 {offsets = [5, 0, 0], sizes = [1, 8, 8], strides = [1, 1, 1]} : vector<8x8x8xf32> to vector<1x8x8xf32>
    %267 = vector.shape_cast %266 : vector<1x8x8xf32> to vector<8x8xf32>
    %268 = vector.extract_strided_slice %254 {offsets = [6, 0, 0], sizes = [1, 8, 8], strides = [1, 1, 1]} : vector<8x8x8xf32> to vector<1x8x8xf32>
    %269 = vector.shape_cast %268 : vector<1x8x8xf32> to vector<8x8xf32>
    %270 = vector.extract_strided_slice %254 {offsets = [7, 0, 0], sizes = [1, 8, 8], strides = [1, 1, 1]} : vector<8x8x8xf32> to vector<1x8x8xf32>
    %271 = vector.shape_cast %270 : vector<1x8x8xf32> to vector<8x8xf32>
    %272 = tpu.concatenate %265, %267, %269, %271 in 1 : vector<8x8xf32>, vector<8x8xf32>, vector<8x8xf32>, vector<8x8xf32> -> vector<8x32xf32>
    %273 = tpu.concatenate %263, %272 in 0 : vector<8x32xf32>, vector<8x32xf32> -> vector<16x32xf32>
    %cst_55 = arith.constant dense<0.000000e+00> : vector<16x32xf32>
    %274 = tpu.matmul %273, %169, %cst_55 {dimension_numbers = #tpu.dot_dimension_numbers<[1], [0], [0], [1], [0, 0, 1, 1], [], []>} : vector<16x32xf32>, vector<32x32xf32>, vector<16x32xf32> -> vector<16x32xf32>
    %275 = vector.broadcast %177 : vector<1x32xf32> to vector<16x32xf32>
    %276 = arith.addf %274, %275 : vector<16x32xf32>
    %277 = arith.addf %165, %276 : vector<16x32xf32>
    %cst_56 = arith.constant dense<0.000000e+00> : vector<16xf32>
    %278 = vector.multi_reduction <add>, %277, %cst_56 [1] : vector<16x32xf32> to vector<16xf32>
    %279 = vector.shape_cast %278 : vector<16xf32> to vector<16x1xf32>
    %cst_57 = arith.constant 3.200000e+01 : f32
    %280 = vector.broadcast %cst_57 : f32 to vector<16x1xf32>
    %281 = arith.divf %279, %280 : vector<16x1xf32>
    %282 = vector.broadcast %281 : vector<16x1xf32> to vector<16x32xf32>
    %283 = arith.subf %277, %282 : vector<16x32xf32>
    %284 = arith.mulf %283, %283 : vector<16x32xf32>
    %cst_58 = arith.constant dense<0.000000e+00> : vector<16xf32>
    %285 = vector.multi_reduction <add>, %284, %cst_58 [1] : vector<16x32xf32> to vector<16xf32>
    %286 = vector.shape_cast %285 : vector<16xf32> to vector<16x1xf32>
    %cst_59 = arith.constant 3.200000e+01 : f32
    %287 = vector.broadcast %cst_59 : f32 to vector<16x1xf32>
    %288 = arith.divf %286, %287 : vector<16x1xf32>
    %289 = vector.broadcast %281 : vector<16x1xf32> to vector<16x32xf32>
    %290 = arith.subf %277, %289 : vector<16x32xf32>
    %cst_60 = arith.constant 9.99999974E-6 : f32
    %291 = vector.broadcast %cst_60 : f32 to vector<16x1xf32>
    %292 = arith.addf %288, %291 : vector<16x1xf32>
    %293 = math.rsqrt %292 : vector<16x1xf32>
    %294 = vector.broadcast %293 : vector<16x1xf32> to vector<16x32xf32>
    %295 = arith.mulf %290, %294 : vector<16x32xf32>
    %296 = vector.broadcast %178 : vector<1x32xf32> to vector<16x32xf32>
    %297 = arith.mulf %295, %296 : vector<16x32xf32>
    %298 = vector.broadcast %179 : vector<1x32xf32> to vector<16x32xf32>
    %299 = arith.addf %297, %298 : vector<16x32xf32>
    %cst_61 = arith.constant dense<0.000000e+00> : vector<16x64xf32>
    %300 = tpu.matmul %299, %171, %cst_61 {dimension_numbers = #tpu.dot_dimension_numbers<[1], [0], [0], [1], [0, 0, 1, 1], [], []>} : vector<16x32xf32>, vector<32x64xf32>, vector<16x64xf32> -> vector<16x64xf32>
    %301 = vector.broadcast %180 : vector<1x64xf32> to vector<16x64xf32>
    %302 = arith.addf %300, %301 : vector<16x64xf32>
    %cst_62 = arith.constant 0.000000e+00 : f32
    %303 = vector.broadcast %cst_62 : f32 to vector<16x64xf32>
    %304 = arith.maximumf %302, %303 : vector<16x64xf32>
    %cst_63 = arith.constant dense<0.000000e+00> : vector<16x32xf32>
    %305 = tpu.matmul %304, %173, %cst_63 {dimension_numbers = #tpu.dot_dimension_numbers<[1], [0], [0], [1], [0, 0, 1, 1], [], []>} : vector<16x64xf32>, vector<64x32xf32>, vector<16x32xf32> -> vector<16x32xf32>
    %306 = vector.broadcast %181 : vector<1x32xf32> to vector<16x32xf32>
    %307 = arith.addf %305, %306 : vector<16x32xf32>
    %308 = arith.addf %299, %307 : vector<16x32xf32>
    %cst_64 = arith.constant dense<0.000000e+00> : vector<16xf32>
    %309 = vector.multi_reduction <add>, %308, %cst_64 [1] : vector<16x32xf32> to vector<16xf32>
    %310 = vector.shape_cast %309 : vector<16xf32> to vector<16x1xf32>
    %cst_65 = arith.constant 3.200000e+01 : f32
    %311 = vector.broadcast %cst_65 : f32 to vector<16x1xf32>
    %312 = arith.divf %310, %311 : vector<16x1xf32>
    %313 = vector.broadcast %312 : vector<16x1xf32> to vector<16x32xf32>
    %314 = arith.subf %308, %313 : vector<16x32xf32>
    %315 = arith.mulf %314, %314 : vector<16x32xf32>
    %cst_66 = arith.constant dense<0.000000e+00> : vector<16xf32>
    %316 = vector.multi_reduction <add>, %315, %cst_66 [1] : vector<16x32xf32> to vector<16xf32>
    %317 = vector.shape_cast %316 : vector<16xf32> to vector<16x1xf32>
    %cst_67 = arith.constant 3.200000e+01 : f32
    %318 = vector.broadcast %cst_67 : f32 to vector<16x1xf32>
    %319 = arith.divf %317, %318 : vector<16x1xf32>
    %320 = vector.broadcast %312 : vector<16x1xf32> to vector<16x32xf32>
    %321 = arith.subf %308, %320 : vector<16x32xf32>
    %cst_68 = arith.constant 9.99999974E-6 : f32
    %322 = vector.broadcast %cst_68 : f32 to vector<16x1xf32>
    %323 = arith.addf %319, %322 : vector<16x1xf32>
    %324 = math.rsqrt %323 : vector<16x1xf32>
    %325 = vector.broadcast %324 : vector<16x1xf32> to vector<16x32xf32>
    %326 = arith.mulf %321, %325 : vector<16x32xf32>
    %327 = vector.broadcast %182 : vector<1x32xf32> to vector<16x32xf32>
    %328 = arith.mulf %326, %327 : vector<16x32xf32>
    %329 = vector.broadcast %183 : vector<1x32xf32> to vector<16x32xf32>
    %330 = arith.addf %328, %329 : vector<16x32xf32>
    %c0_69 = arith.constant 0 : index
    %c0_70 = arith.constant 0 : index
    %331 = vector.load %arg7[%c0_69, %c0_70] : memref<16x32xf32, #tpu.memory_space<vmem>>, vector<16x32xf32>
    tpu.vector_store %arg7[%c0_69, %c0_70], %330 {strides = array<i32>} : memref<16x32xf32, #tpu.memory_space<vmem>>, vector<16x32xf32>,
    return
  }
  func.func @transform_0(%arg0: i32) -> (i32, i32) {
    %c0_i32 = arith.constant 0 : i32
    %c0_i32_0 = arith.constant 0 : i32
    %c0_i32_1 = arith.constant 0 : i32
    return %c0_i32, %c0_i32_0 : i32, i32
  }
  func.func @transform_1(%arg0: i32) -> (i32, i32, i32) {
    %c0_i32 = arith.constant 0 : i32
    %c0_i32_0 = arith.constant 0 : i32
    %c0_i32_1 = arith.constant 0 : i32
    %c0_i32_2 = arith.constant 0 : i32
    return %c0_i32, %c0_i32_0, %c0_i32_1 : i32, i32, i32
  }
  func.func @transform_2(%arg0: i32) -> (i32, i32, i32) {
    %c0_i32 = arith.constant 0 : i32
    %c0_i32_0 = arith.constant 0 : i32
    %c0_i32_1 = arith.constant 0 : i32
    %c0_i32_2 = arith.constant 0 : i32
    return %c0_i32, %c0_i32_0, %c0_i32_1 : i32, i32, i32
  }
  func.func @transform_3(%arg0: i32) -> (i32, i32, i32) {
    %c0_i32 = arith.constant 0 : i32
    %c0_i32_0 = arith.constant 0 : i32
    %c0_i32_1 = arith.constant 0 : i32
    %c0_i32_2 = arith.constant 0 : i32
    return %c0_i32, %c0_i32_0, %c0_i32_1 : i32, i32, i32
  }
  func.func @transform_4(%arg0: i32) -> (i32, i32, i32) {
    %c0_i32 = arith.constant 0 : i32
    %c0_i32_0 = arith.constant 0 : i32
    %c0_i32_1 = arith.constant 0 : i32
    %c0_i32_2 = arith.constant 0 : i32
    return %c0_i32, %c0_i32_0, %c0_i32_1 : i32, i32, i32
  }
  func.func @transform_5(%arg0: i32) -> (i32, i32, i32) {
    %c0_i32 = arith.constant 0 : i32
    %c0_i32_0 = arith.constant 0 : i32
    %c0_i32_1 = arith.constant 0 : i32
    %c0_i32_2 = arith.constant 0 : i32
    return %c0_i32, %c0_i32_0, %c0_i32_1 : i32, i32, i32
  }
  func.func @transform_6(%arg0: i32) -> (i32, i32) {
    %c0_i32 = arith.constant 0 : i32
    %c0_i32_0 = arith.constant 0 : i32
    %c0_i32_1 = arith.constant 0 : i32
    return %c0_i32, %c0_i32_0 : i32, i32
  }
}

</mosaic_0001>

<bundles_post_ra>
// kernel: tpu_custom_call.1
= control target key start
LH: loop header
LB: loop body
LE: loop exit
PB: predicated region body
PF: predicated region fallthrough
CT: control target
= control target key end

     0   :  { %11 = vsyncpa [#allocation3], 0  ;;  %s2568_s0 = inlined_call_operand.hbm [shape: f32[16,32], index: 0, kind: input, shape index: {}]   ;;  %s2569_s1 = inlined_call_operand.vmem [shape: f32[2,32,96], index: 1, kind: input, shape index: {}]   ;;  %s2570_s2 = inlined_call_operand.vmem [shape: f32[2,32,32], index: 2, kind: input, shape index: {}]   ;;  %s2571_s3 = inlined_call_operand.vmem [shape: f32[2,32,64], index: 3, kind: input, shape index: {}]   ;;  %s2572_s4 = inlined_call_operand.vmem [shape: f32[2,64,32], index: 4, kind: input, shape index: {}]   ;;  %s2573_s5 = inlined_call_operand.hbm [shape: f32[2,8,128], index: 5, kind: input, shape index: {}]   ;;  %s2574_s6 = inlined_call_operand.hbm [shape: f32[16,32], index: 6, kind: output, shape index: {}]  }
   0x1   :  { %12 = vsyncpa [#allocation6], 0 }
   0x2   :  { %13 = vsyncpa [#allocation4], 0  ;;  %s18_s23 = sshll.u32 %s2568_s0, 4  ;;  %s2001_s24 = smov [#allocation2]   ;;  %s19_s23 = int_to_ptr.hbm [resolvable:$true] %s18_s23 }
   0x3   :  { %s20_s25 = sshll.u32 %s2001_s24, 4  ;;  %s39_s28 = sshll.u32 %s2573_s5, 4  ;;  %s21_s25 = int_to_ptr.vmem [resolvable:$true] %s20_s25  ;;  %s40_s28 = int_to_ptr.hbm [resolvable:$true] %s39_s28 }
   0x4   :  { %s2002_s29 = smov 128   ;;  %s2003_s30 = smov 8  }
   0x5   :  { %26 = dma.hbm_to_vmem [thread:$0]  %s19_s23, 256, %s21_s25, [#allocation3], %s2002_s29, %s2002_s29, %s2003_s30  }
   0x6   :  { %s2004_s7 = smov [#allocation5]  }
   0x7   :  { %s41_s8 = sshll.u32 %s2004_s7, 4  ;;  %s42_s8 = int_to_ptr.vmem [resolvable:$true] %s41_s8 }
   0x8   :  { %47 = dma.hbm_to_vmem [thread:$0]  %s40_s28, 256, %s42_s8, [#allocation6], %s2002_s29, %s2002_s29, %s2003_s30  }
   0x9   :  { %1995 = dma.done.wait [#allocation3], 256  }
   0xa   :  { %1996 = vsyncadd [#allocation3], 4294967040 }
   0xb   :  { %1997 = dma.done.wait [#allocation6], 256  }
   0xc   :  { %1998 = vsyncadd [#allocation6], 4294967040  ;;  %v61_v0 = vld [vmem:[%s2569_s1 + $0x18] sm:$0xff]  ;;  %v60_v1 = vld [vmem:[%s2569_s1 + $0x10] sm:$0xff]  ;;  %vm80_vm0 = vcmask 261120   ;;  %s2005_s15 = smov 104  }
   0xd   :  { %99 = vmatpush.msra.mxu0 %v61_v0  ;;  %v59_v2 = vld [vmem:[%s2569_s1 + $0x8] sm:$0xff]  ;;  %v58_v3 = vld [vmem:[%s2569_s1] sm:$0xff]  ;;  %v2081_v6 = vld [vmem:[#allocation5] sm:$0xff]  ;;  %s2006_s16 = smov 120   ;;  %s2007_s17 = smov 112   ;;  %vm142_vm1 = vcmask 64512  }
   0xe   :  { %v2073_v4 = vld [vmem:[#allocation2] sm:$0xff]  ;;  %v2077_v5 = vld [vmem:[#allocation2 + $0x8] sm:$0xff]  ;;  %v79_v7 = vperm.slane %v2081_v6, 0  ;;  %s2008_s18 = smov 96   ;;  %s2009_s19 = smov 64   ;;  %vm658_vm2 = vcmask 130048  }
   0xf   :  { %100 = vmatpush.msra.mxu0 %v60_v1  ;;  %s2010_s20 = smov 24   ;;  %s2011_s21 = smov 16   ;;  %vm660_vm3 = vcmask 195584   ;;  %vm799_vm11 = vcmask 523264  }
  0x11   :  { %101 = vmatpush.msra.mxu0 %v59_v2 }
  0x13   :  { %102 = vmatpush.msra.mxu0 %v58_v3 }
  0x14   :  { %1719 = vmatmul.msk.f32.vlgmr.msra.gmra.mxu0 %vm80_vm0, %v2073_v4 }
  0x1c   :  { %1720 = vmatmul.msk.f32.gmra.mxu0 %vm80_vm0, %v2077_v5 }
  0x91   :  { %v104_v8 = vpop.f32.mrf.mxu0 }
  0x92   :  { %v2084_v9 = vadd.f32 %v104_v8, %v79_v7 }
  0x94   :  { %131 = vrot.lane.b32.xlu1 %v2084_v9, %s2005_s15  ;;  %127 = vrot.lane.b32.xlu0 %v2084_v9, %s2006_s16  ;;  %v110_v12 = vmul.f32 0.35355338, %v2084_v9 }
  0x99   :  { %v107_v10 = vpop.f32.mrf.mxu0 }
  0x9a   :  { %v2090_v11 = vadd.f32 %v107_v10, %v79_v7 }
  0x9c   :  { %134 = vrot.lane.b32.xlu2 %v2090_v11, %s2006_s16  ;;  %138 = vrot.lane.b32.xlu1 %v2090_v11, %s2005_s15  ;;  %v111_v22 = vmul.f32 0.35355338, %v2090_v11 }
  0x9d   :  { %129 = vrot.lane.b32.xlu0 %v2084_v9, %s2007_s17 }
  0xa4   :  { %136 = vrot.lane.b32.xlu2 %v2090_v11, %s2007_s17  ;;  %140 = vrot.lane.b32.xlu1 %v2084_v9, %s2008_s18 }
  0xa5   :  { %245 = vrot.lane.b32.xlu0 %v2090_v11, %s2008_s18 }
  0xac   :  { %113 = vrot.lane.b32.xlu2 %v110_v12, %s2006_s16 }
  0xf6   :  { %v2106_v13 = vpop.permute.xlu2 %134 }
  0xfe   :  { %v2108_v14 = vpop.permute.xlu2 %136 }
  0xff   :  { %v1826_v15 = vpack.i.bf16 %v2108_v14, %v2106_v13 }
 0x106   :  { %v2112_v16 = vpop.permute.xlu1 %131  ;;  %v2114_v17 = vpop.permute.xlu0 %127 }
 0x107   :  { %v1816_v18 = vpack.i.bf16 %v2114_v17, %v2112_v16  ;;  %167 = vrot.lane.b32.xlu0 %v2114_v17, %s2008_s18  ;;  %219 = vrot.lane.b32.xlu2 %v2112_v16, %s2008_s18  ;;  %v114_v25 = vpop.permute.xlu2 %113 }
 0x10e   :  { %v2122_v19 = vpop.permute.xlu1 %138 }
 0x10f   :  { %v2124_v20 = vpop.permute.xlu0 %129  ;;  %115 = vrot.lane.b32.xlu0 %v110_v12, %s2007_s17  ;;  %117 = vrot.lane.b32.xlu2 %v110_v12, %s2005_s15 }
 0x110   :  { %v1821_v21 = vpack.i.bf16 %v2122_v19, %v2124_v20  ;;  %193 = vrot.lane.b32.xlu1 %v2124_v20, %s2008_s18 }
 0x116   :  { %v141_v23 = vpop.permute.xlu1 %140 }
 0x117   :  { %v246_v24 = vpop.permute.xlu0 %245  ;;  %1721 = vmatpush.xpose.msk.msra.mxu1 %vm142_vm1, %v141_v23  ;;  %124 = vrot.lane.b32.xlu0 %v111_v22, %s2005_s15 }
 0x118   :  { %323 = vrot.lane.b32.xlu1 %v2122_v19, %s2008_s18  ;;  %1729 = vmatpush.xpose.msk.msra.mxu2 %vm142_vm1, %v246_v24 }
 0x119   :  { %120 = vrot.lane.b32.xlu2 %v111_v22, %s2006_s16 }
 0x11a   :  { %1722 = vmatmul.msk.f32.vlgmr.msra.gmra.mxu1 %vm142_vm1, %v110_v12 }
 0x11b   :  { %1730 = vmatmul.msk.f32.vlgmr.msra.gmra.mxu2 %vm142_vm1, %v111_v22 }
 0x11f   :  { %297 = vrot.lane.b32.xlu0 %v2108_v14, %s2008_s18 }
 0x120   :  { %271 = vrot.lane.b32.xlu1 %v2106_v13, %s2008_s18 }
 0x128   :  { %122 = vrot.lane.b32.xlu1 %v111_v22, %s2007_s17 }
 0x161   :  { %v220_v26 = vpop.permute.xlu2 %219 }
 0x162   :  { %1727 = vmatpush.xpose.msk.msrb.mxu1 %vm142_vm1, %v220_v26 }
 0x169   :  { %v118_v27 = vpop.permute.xlu2 %117 }
 0x16a   :  { %1728 = vmatmul.msk.f32.vlgmr.msrb.gmra.mxu1 %vm142_vm1, %v118_v27 }
 0x173   :  { %v121_v35 = vpop.permute.xlu2 %120 }
 0x179   :  { %v168_v28 = vpop.permute.xlu0 %167 }
 0x17a   :  { %1723 = vmatpush.xpose.msk.msra.mxu3 %vm142_vm1, %v168_v28 }
 0x17d   :  { %1724 = vmatmul.msk.f32.vlgmr.msra.gmra.mxu3 %vm142_vm1, %v114_v25 }
 0x181   :  { %v116_v29 = vpop.permute.xlu0 %115 }
 0x182   :  { %v194_v30 = vpop.permute.xlu1 %193 }
 0x183   :  { %1725 = vmatpush.xpose.msk.msrb.mxu3 %vm142_vm1, %v194_v30 }
 0x186   :  { %1726 = vmatmul.msk.f32.vlgmr.msrb.gmra.mxu3 %vm142_vm1, %v116_v29 }
 0x189   :  { %v125_v31 = vpop.permute.xlu0 %124 }
 0x18a   :  { %v324_v32 = vpop.permute.xlu1 %323 }
 0x18b   :  { %1735 = vmatpush.xpose.msk.msrb.mxu2 %vm142_vm1, %v324_v32 }
 0x18e   :  { %1736 = vmatmul.msk.f32.vlgmr.msrb.gmra.mxu2 %vm142_vm1, %v125_v31 }
 0x191   :  { %v298_v33 = vpop.permute.xlu0 %297 }
 0x192   :  { %v272_v34 = vpop.permute.xlu1 %271  ;;  %1733 = vmatpush.xpose.msk.msra.mxu1 %vm142_vm1, %v298_v33 }
 0x193   :  { %1731 = vmatpush.xpose.msk.msra.mxu3 %vm142_vm1, %v272_v34 }
 0x196   :  { %1732 = vmatmul.msk.f32.vlgmr.msra.gmra.mxu3 %vm142_vm1, %v121_v35 }
 0x197   :  { %v2158_v37 = vpop.f32.mrf.mxu1 }
 0x198   :  { %v349_v47 = vsel %vm142_vm1, %v2158_v37, -inf }
 0x19a   :  { %v123_v36 = vpop.permute.xlu1 %122 }
 0x19b   :  { %1734 = vmatmul.msk.f32.vlgmr.msra.gmra.mxu1 %vm142_vm1, %v123_v36 }
 0x19e   :  { %v2161_v40 = vpop.f32.mrf.mxu2 }
 0x19f   :  { %v361_v41 = vsel %vm142_vm1, %v2161_v40, -inf }
 0x1e7   :  { %v242_v38 = vpop.f32.mrf.mxu1 }
 0x1e8   :  { %v358_v39 = vsel %vm142_vm1, %v242_v38, -inf }
 0x1e9   :  { %359 = vmax.xlane.f32.xlu2 %v358_v39 }
 0x1f1   :  { %362 = vmax.xlane.f32.xlu2 %v361_v41 }
 0x200   :  { %v190_v42 = vpop.f32.mrf.mxu3 }
 0x201   :  { %v352_v43 = vsel %vm142_vm1, %v190_v42, -inf }
 0x202   :  { %353 = vmax.xlane.f32.xlu0 %v352_v43 }
 0x209   :  { %v216_v44 = vpop.f32.mrf.mxu3 }
 0x20a   :  { %v355_v45 = vsel %vm142_vm1, %v216_v44, -inf }
 0x20b   :  { %356 = vmax.xlane.f32.xlu1 %v355_v45 }
 0x211   :  { %v346_v46 = vpop.f32.mrf.mxu2 }
 0x212   :  { %v370_v48 = vsel %vm142_vm1, %v346_v46, -inf }
 0x213   :  { %350 = vmax.xlane.f32.xlu1 %v349_v47  ;;  %371 = vmax.xlane.f32.xlu2 %v370_v48 }
 0x218   :  { %v320_v49 = vpop.f32.mrf.mxu1 }
 0x219   :  { %v294_v50 = vpop.f32.mrf.mxu3  ;;  %v367_v51 = vsel %vm142_vm1, %v320_v49, -inf }
 0x21a   :  { %368 = vmax.xlane.f32.xlu0 %v367_v51  ;;  %v364_v52 = vsel %vm142_vm1, %v294_v50, -inf }
 0x21b   :  { %365 = vmax.xlane.f32.xlu2 %v364_v52 }
 0x233   :  { %1822 = vrot.lane.b32.xlu2 %v1821_v21, %s2009_s19 }
 0x25c   :  { %v360_v53 = vpop.xlane.xlu2 %359 }
 0x25d   :  { %v376_v54 = vsub.f32 %v242_v38, %v360_v53 }
 0x25f   :  { %v387_v55 = vmul.f32 1.442695, %v376_v54 }
 0x261   :  { %1841 = vpow2.f32 %v387_v55 }
 0x264   :  { %v363_v61 = vpop.xlane.xlu2 %362 }
 0x267   :  { %v2176_v56 = vpop.eup %1841 }
 0x268   :  { %v406_v57 = vsel %vm142_vm1, %v2176_v56, 0.0 }
 0x269   :  { %407 = vadd.xlane.f32.xlu0 %v406_v57 }
 0x275   :  { %v354_v58 = vpop.xlane.xlu0 %353 }
 0x276   :  { %v374_v59 = vsub.f32 %v190_v42, %v354_v58 }
 0x278   :  { %v383_v60 = vmul.f32 1.442695, %v374_v59 }
 0x27a   :  { %1843 = vpow2.f32 %v383_v60 }
 0x27e   :  { %v357_v62 = vpop.xlane.xlu1 %356 }
 0x27f   :  { %v375_v63 = vsub.f32 %v216_v44, %v357_v62 }
 0x280   :  { %v2180_v0 = vpop.eup %1843 }
 0x281   :  { %v385_v1 = vmul.f32 1.442695, %v375_v63  ;;  %v400_v2 = vsel %vm142_vm1, %v2180_v0, 0.0 }
 0x282   :  { %401 = vadd.xlane.f32.xlu1 %v400_v2 }
 0x283   :  { %1845 = vpow2.f32 %v385_v1 }
 0x286   :  { %v372_v3 = vpop.xlane.xlu2 %371  ;;  %v351_v33 = vpop.xlane.xlu1 %350 }
 0x287   :  { %v380_v21 = vsub.f32 %v346_v46, %v372_v3  ;;  %v373_v34 = vsub.f32 %v2158_v37, %v351_v33 }
 0x289   :  { %v1846_v7 = vpop.eup %1845  ;;  %v395_v24 = vmul.f32 1.442695, %v380_v21  ;;  %v381_v35 = vmul.f32 1.442695, %v373_v34  ;;  %v64_v21 = vld [vmem:[%s2570_s2 + $0x10] sm:$0xff] }
 0x28a   :  { %v403_v8 = vsel %vm142_vm1, %v1846_v7, 0.0 }
 0x28b   :  { %404 = vadd.xlane.f32.xlu2 %v403_v8 }
 0x28d   :  { %v369_v10 = vpop.xlane.xlu0 %368 }
 0x28e   :  { %v379_v12 = vsub.f32 %v320_v49, %v369_v10  ;;  %v366_v19 = vpop.xlane.xlu2 %365 }
 0x28f   :  { %v378_v20 = vsub.f32 %v294_v50, %v366_v19 }
 0x290   :  { %v393_v22 = vmul.f32 1.442695, %v379_v12 }
 0x291   :  { %v391_v23 = vmul.f32 1.442695, %v378_v20  ;;  %v65_v20 = vld [vmem:[%s2570_s2 + $0x18] sm:$0xff] }
 0x292   :  { %1847 = vpow2.f32 %v393_v22  ;;  %v63_v22 = vld [vmem:[%s2570_s2 + $0x8] sm:$0xff] }
 0x293   :  { %1849 = vpow2.f32 %v391_v23  ;;  %v62_v23 = vld [vmem:[%s2570_s2] sm:$0xff] }
 0x294   :  { %1851 = vpow2.f32 %v395_v24 }
 0x295   :  { %1853 = vpow2.f32 %v381_v35 }
 0x296   :  { %v1823_v25 = vpop.permute.xlu2 %1822 }
 0x297   :  { %v1824_v26 = vunpack.i.l.bf16 %v1823_v25  ;;  %v1825_v48 = vunpack.i.h.bf16 %v1823_v25 }
 0x298   :  { %v2185_v27 = vpop.eup %1847 }
 0x299   :  { %v2187_v28 = vpop.eup %1849  ;;  %510 = vmatpush.msrb.mxu1 %v1824_v26  ;;  %v415_v29 = vsel %vm142_vm1, %v2185_v27, 0.0 }
 0x29a   :  { %416 = vadd.xlane.f32.xlu0 %v415_v29  ;;  %v412_v30 = vsel %vm142_vm1, %v2187_v28, 0.0  ;;  %v1852_v31 = vpop.eup %1851 }
 0x29b   :  { %413 = vadd.xlane.f32.xlu2 %v412_v30  ;;  %1817 = vrot.lane.b32.xlu1 %v1816_v18, %s2009_s19  ;;  %v418_v32 = vsel %vm142_vm1, %v1852_v31, 0.0  ;;  %v1854_v16 = vpop.eup %1853  ;;  %v377_v18 = vsub.f32 %v2161_v40, %v363_v61 }
 0x29c   :  { %v397_v17 = vsel %vm142_vm1, %v1854_v16, 0.0 }
 0x29d   :  { %v389_v36 = vmul.f32 1.442695, %v377_v18  ;;  %v677_v18 = vperm.slane %v2081_v6, 1 }
 0x29f   :  { %1855 = vpow2.f32 %v389_v36 }
 0x2a2   :  { %419 = vadd.xlane.f32.xlu0 %v418_v32 }
 0x2a5   :  { %v1856_v37 = vpop.eup %1855 }
 0x2b3   :  { %437 = vrot.lane.b32.xlu2 %v2084_v9, %s2009_s19  ;;  %v409_v9 = vsel %vm142_vm1, %v1856_v37, 0.0 }
 0x2b6   :  { %1827 = vrot.lane.b32.xlu0 %v1826_v15, %s2009_s19 }
 0x2bb   :  { %541 = vrot.lane.b32.xlu2 %v2090_v11, %s2009_s19 }
 0x2c5   :  { %398 = vadd.xlane.f32.xlu1 %v397_v17 }
 0x2dc   :  { %v408_v13 = vpop.xlane.xlu0 %407 }
 0x2e0   :  { %410 = vadd.xlane.f32.xlu0 %v409_v9 }
 0x2f5   :  { %v402_v14 = vpop.xlane.xlu1 %401 }
 0x2fe   :  { %v405_v38 = vpop.xlane.xlu2 %404 }
 0x2ff   :  { %1857 = vrcp.f32 %v405_v38 }
 0x300   :  { %1859 = vrcp.f32 %v408_v13 }
 0x301   :  { %1861 = vrcp.f32 %v402_v14 }
 0x305   :  { %v1858_v15 = vpop.eup %1857 }
 0x306   :  { %v431_v11 = vmul.f32 %v1858_v15, %v1846_v7  ;;  %v1860_v39 = vpop.eup %1859 }
 0x307   :  { %v1862_v41 = vpop.eup %1861  ;;  %v432_v46 = vmul.f32 %v1860_v39, %v2176_v56  ;;  %v2012_v39 = vmov 32.0  }
 0x308   :  { %1739 = vmatmul.msk.f32.vlgmr.msrb.gmra.mxu1 %vm142_vm1, %v431_v11  ;;  %v430_v47 = vmul.f32 %v1862_v41, %v2180_v0 }
 0x30d   :  { %v417_v42 = vpop.xlane.xlu0 %416  ;;  %v1818_v40 = vpop.permute.xlu1 %1817 }
 0x30e   :  { %v1819_v43 = vunpack.i.l.bf16 %v1818_v40  ;;  %v414_v44 = vpop.xlane.xlu2 %413  ;;  %v1820_v45 = vunpack.i.h.bf16 %v1818_v40 }
 0x310   :  { %484 = vmatpush.msrb.mxu0 %v1820_v45  ;;  %536 = vmatpush.msra.mxu2 %v1819_v43 }
 0x311   :  { %1738 = vmatmul.msk.f32.vlgmr.msrb.gmra.mxu0 %vm142_vm1, %v430_v47  ;;  %1740 = vmatmul.msk.f32.vlgmr.msra.gmra.mxu2 %vm142_vm1, %v432_v46 }
 0x312   :  { %640 = vmatpush.msrb.mxu2 %v1825_v48 }
 0x315   :  { %v420_v49 = vpop.xlane.xlu0 %419 }
 0x316   :  { %1863 = vrcp.f32 %v420_v49  ;;  %v438_v50 = vpop.permute.xlu2 %437 }
 0x317   :  { %458 = vmatpush.msrb.mxu3 %v438_v50  ;;  %1865 = vrcp.f32 %v417_v42 }
 0x318   :  { %1867 = vrcp.f32 %v414_v44 }
 0x31c   :  { %v1864_v51 = vpop.eup %1863 }
 0x31d   :  { %v436_v52 = vmul.f32 %v1864_v51, %v1852_v31  ;;  %v1866_v54 = vpop.eup %1865 }
 0x31e   :  { %v542_v53 = vpop.permute.xlu2 %541  ;;  %v1868_v55 = vpop.eup %1867  ;;  %v435_v59 = vmul.f32 %v1866_v54, %v2185_v27  ;;  %v69_v54 = vld [vmem:[%s2571_s3 + $0x18] sm:$0xff] }
 0x31f   :  { %562 = vmatpush.msra.mxu3 %v542_v53  ;;  %1744 = vmatmul.msk.f32.vlgmr.msrb.gmra.mxu2 %vm142_vm1, %v436_v52  ;;  %v434_v60 = vmul.f32 %v1868_v55, %v2187_v28  ;;  %v68_v55 = vld [vmem:[%s2571_s3 + $0x10] sm:$0xff] }
 0x328   :  { %v1828_v56 = vpop.permute.xlu0 %1827 }
 0x329   :  { %v1830_v57 = vunpack.i.h.bf16 %v1828_v56  ;;  %v1829_v58 = vunpack.i.l.bf16 %v1828_v56  ;;  %v67_v56 = vld [vmem:[%s2571_s3 + $0x8] sm:$0xff] }
 0x32b   :  { %588 = vmatpush.msra.mxu0 %v1829_v58  ;;  %614 = vmatpush.msra.mxu1 %v1830_v57  ;;  %v66_v57 = vld [vmem:[%s2571_s3] sm:$0xff] }
 0x32c   :  { %1742 = vmatmul.msk.f32.vlgmr.msra.gmra.mxu0 %vm142_vm1, %v434_v60  ;;  %1743 = vmatmul.msk.f32.vlgmr.msra.gmra.mxu1 %vm142_vm1, %v435_v59 }
 0x32d   :  { %785 = vmatpush.msrb.mxu0 %v69_v54 }
 0x32f   :  { %786 = vmatpush.msrb.mxu0 %v68_v55 }
 0x331   :  { %787 = vmatpush.msrb.mxu0 %v67_v56 }
 0x333   :  { %788 = vmatpush.msrb.mxu0 %v66_v57 }
 0x338   :  { %v399_v61 = vpop.xlane.xlu1 %398 }
 0x339   :  { %1869 = vrcp.f32 %v399_v61 }
 0x33f   :  { %v1870_v62 = vpop.eup %1869 }
 0x340   :  { %v429_v63 = vmul.f32 %v1870_v62, %v1854_v16 }
 0x342   :  { %1737 = vmatmul.msk.f32.vlgmr.msrb.gmra.mxu3 %vm142_vm1, %v429_v63 }
 0x343   :  { %696 = vmatpush.msrb.mxu3 %v65_v20 }
 0x345   :  { %697 = vmatpush.msrb.mxu3 %v64_v21 }
 0x347   :  { %698 = vmatpush.msrb.mxu3 %v63_v22  ;;  %v763_v22 = vperm.slane %v2081_v6, 3 }
 0x349   :  { %699 = vmatpush.msrb.mxu3 %v62_v23  ;;  %v74_v23 = vld [vmem:[%s2572_s4 + $0x20] sm:$0xff] }
 0x353   :  { %v411_v0 = vpop.xlane.xlu0 %410 }
 0x354   :  { %1871 = vrcp.f32 %v411_v0 }
 0x355   :  { %1873 = vrcp.f32 %v2012_v39 }
 0x35a   :  { %v1872_v1 = vpop.eup %1871 }
 0x35b   :  { %v433_v2 = vmul.f32 %v1872_v1, %v1856_v37  ;;  %v1874_v41 = vpop.eup %1873 }
 0x35c   :  { %v716_v42 = vmul.f32 32.0, %v1874_v41  ;;  %vm720_vm4 = vweird.f32 %v1874_v41 }
 0x35d   :  { %1741 = vmatmul.msk.f32.vlgmr.msra.gmra.mxu3 %vm142_vm1, %v433_v2  ;;  %v77_v2 = vld [vmem:[%s2572_s4 + $0x38] sm:$0xff] }
 0x35e   :  { %v717_v40 = vsub.f32 1.0, %v716_v42  ;;  %814 = vmatpush.msrb.mxu1 %v77_v2 }
 0x360   :  { %v718_v43 = vmul.f32 %v1874_v41, %v717_v40 }
 0x362   :  { %v719_v44 = vadd.f32 %v1874_v41, %v718_v43 }
 0x364   :  { %v2253_v45 = vsel %vm720_vm4, %v1874_v41, %v719_v44  ;;  %v798_v41 = vperm.slane %v2081_v6, 5 }
 0x385   :  { %v512_v8 = vpop.f32.mrf.mxu1 }
 0x38e   :  { %v486_v3 = vpop.f32.mrf.mxu0 }
 0x38f   :  { %646 = vrot.lane.b32.xlu2 %v486_v3, %s2003_s30  ;;  %v76_v3 = vld [vmem:[%s2572_s4 + $0x30] sm:$0xff] }
 0x390   :  { %815 = vmatpush.msrb.mxu1 %v76_v3 }
 0x394   :  { %v538_v7 = vpop.f32.mrf.mxu2 }
 0x395   :  { %654 = vrot.lane.b32.xlu1 %v538_v7, %s2010_s20 }
 0x397   :  { %650 = vrot.lane.b32.xlu2 %v512_v8, %s2011_s21  ;;  %v760_v8 = vperm.slane %v2081_v6, 2 }
 0x3a2   :  { %v642_v19 = vpop.f32.mrf.mxu2 }
 0x3a9   :  { %v590_v10 = vpop.f32.mrf.mxu0  ;;  %v616_v12 = vpop.f32.mrf.mxu1 }
 0x3aa   :  { %667 = vrot.lane.b32.xlu0 %v616_v12, %s2011_s21  ;;  %663 = vrot.lane.b32.xlu2 %v590_v10, %s2003_s30  ;;  %v75_v10 = vld [vmem:[%s2572_s4 + $0x28] sm:$0xff] }
 0x3ab   :  { %816 = vmatpush.msrb.mxu1 %v75_v10 }
 0x3ad   :  { %817 = vmatpush.msrb.mxu1 %v74_v23  ;;  %v878_v23 = vperm.slane %v2081_v6, 7 }
 0x3b2   :  { %671 = vrot.lane.b32.xlu2 %v642_v19, %s2010_s20 }
 0x3c5   :  { %v460_v26 = vpop.f32.mrf.mxu3 }
 0x3e0   :  { %v564_v32 = vpop.f32.mrf.mxu3 }
 0x3e9   :  { %v647_v24 = vpop.permute.xlu2 %646 }
 0x3ea   :  { %v657_v27 = vsel %vm142_vm1, %v460_v26, %v647_v24  ;;  %v73_v26 = vld [vmem:[%s2572_s4 + $0x18] sm:$0xff] }
 0x3eb   :  { %818 = vmatpush.msrb.mxu1 %v73_v26 }
 0x3f1   :  { %v651_v25 = vpop.permute.xlu2 %650 }
 0x3f2   :  { %v659_v28 = vsel %vm658_vm2, %v657_v27, %v651_v25 }
 0x404   :  { %v664_v31 = vpop.permute.xlu2 %663 }
 0x405   :  { %v674_v33 = vsel %vm142_vm1, %v564_v32, %v664_v31 }
 0x407   :  { %v655_v29 = vpop.permute.xlu1 %654 }
 0x408   :  { %v661_v30 = vsel %vm660_vm3, %v659_v28, %v655_v29 }
 0x409   :  { %1745 = vmatmul.msk.f32.vlgmr.msrb.gmra.mxu3 %vm80_vm0, %v661_v30 }
 0x40c   :  { %v672_v35 = vpop.permute.xlu2 %671 }
 0x41c   :  { %v668_v34 = vpop.permute.xlu0 %667 }
 0x41d   :  { %v675_v16 = vsel %vm658_vm2, %v674_v33, %v668_v34 }
 0x41e   :  { %v676_v17 = vsel %vm660_vm3, %v675_v16, %v672_v35 }
 0x41f   :  { %1746 = vmatmul.msk.f32.gmra.mxu3 %vm80_vm0, %v676_v17 }
 0x48c   :  { %v701_v36 = vpop.f32.mrf.mxu3 }
 0x48d   :  { %v702_v37 = vadd.f32 %v701_v36, %v677_v18  ;;  %v71_v36 = vld [vmem:[%s2572_s4 + $0x8] sm:$0xff] }
 0x48f   :  { %v707_v9 = vadd.f32 %v702_v37, %v2073_v4  ;;  %v70_v37 = vld [vmem:[%s2572_s4] sm:$0xff] }
 0x491   :  { %v709_v38 = vsel %vm80_vm0, %v707_v9, 0.0 }
 0x492   :  { %710 = vadd.xlane.f32.xlu2 %v709_v38 }
 0x4a2   :  { %v704_v13 = vpop.f32.mrf.mxu3 }
 0x4a3   :  { %v705_v14 = vadd.f32 %v704_v13, %v677_v18  ;;  %v72_v18 = vld [vmem:[%s2572_s4 + $0x10] sm:$0xff] }
 0x4a4   :  { %819 = vmatpush.msrb.mxu1 %v72_v18 }
 0x4a5   :  { %v708_v15 = vadd.f32 %v705_v14, %v2077_v5 }
 0x4a6   :  { %820 = vmatpush.msrb.mxu1 %v71_v36 }
 0x4a7   :  { %v712_v11 = vsel %vm80_vm0, %v708_v15, 0.0 }
 0x4a8   :  { %713 = vadd.xlane.f32.xlu1 %v712_v11  ;;  %821 = vmatpush.msrb.mxu1 %v70_v37 }
 0x505   :  { %v711_v4 = vpop.xlane.xlu2 %710 }
 0x506   :  { %v722_v46 = vmul.f32 %v2253_v45, %v711_v4 }
 0x508   :  { %v724_v47 = vsub.f32 %v707_v9, %v722_v46  ;;  %v766_v9 = vperm.slane %v2081_v6, 4 }
 0x50a   :  { %v726_v48 = vmul.f32 %v724_v47, %v724_v47 }
 0x50c   :  { %v728_v5 = vsel %vm80_vm0, %v726_v48, 0.0 }
 0x50d   :  { %729 = vadd.xlane.f32.xlu0 %v728_v5 }
 0x51b   :  { %v714_v49 = vpop.xlane.xlu1 %713 }
 0x51c   :  { %v723_v50 = vmul.f32 %v2253_v45, %v714_v49 }
 0x51e   :  { %v725_v51 = vsub.f32 %v708_v15, %v723_v50 }
 0x520   :  { %v727_v52 = vmul.f32 %v725_v51, %v725_v51 }
 0x522   :  { %v731_v53 = vsel %vm80_vm0, %v727_v52, 0.0 }
 0x523   :  { %732 = vadd.xlane.f32.xlu2 %v731_v53 }
 0x580   :  { %v730_v58 = vpop.xlane.xlu0 %729 }
 0x581   :  { %v734_v59 = vmul.f32 %v730_v58, %v2253_v45  ;;  %v1754_v58 = vld [vmem:[%s2569_s1 + $0x38] sm:$0xff] }
 0x582   :  { %926 = vmatpush.msra.mxu2 %v1754_v58 }
 0x583   :  { %v736_v60 = vadd.f32 1e-05, %v734_v59  ;;  %v1753_v59 = vld [vmem:[%s2569_s1 + $0x30] sm:$0xff] }
 0x584   :  { %927 = vmatpush.msra.mxu2 %v1753_v59 }
 0x585   :  { %1875 = vrsqrt.f32 %v736_v60  ;;  %vm744_vm6 = vweird.f32 %v736_v60 }
 0x58b   :  { %v1876_v61 = vpop.eup %1875 }
 0x58c   :  { %v739_v62 = vmul.f32 %v1876_v61, %v736_v60  ;;  %vm745_vm5 = vweird.f32 %v1876_v61  ;;  %v1752_v60 = vld [vmem:[%s2569_s1 + $0x28] sm:$0xff] }
 0x58d   :  { %vm746_vm7 = vmor %vm744_vm6, %vm745_vm5  ;;  %928 = vmatpush.msra.mxu2 %v1752_v60 }
 0x58e   :  { %v740_v63 = vmul.f32 %v1876_v61, %v739_v62 }
 0x590   :  { %v741_v0 = vmul.f32 0.5, %v740_v63 }
 0x592   :  { %v742_v1 = vsub.f32 1.5, %v741_v0 }
 0x594   :  { %v743_v7 = vmul.f32 %v1876_v61, %v742_v1 }
 0x596   :  { %v747_v12 = vsel %vm746_vm7, %v1876_v61, %v743_v7  ;;  %v733_v19 = vpop.xlane.xlu2 %732  ;;  %v1751_v61 = vld [vmem:[%s2569_s1 + $0x20] sm:$0xff] }
 0x597   :  { %v758_v20 = vmul.f32 %v747_v12, %v724_v47  ;;  %v735_v21 = vmul.f32 %v733_v19, %v2253_v45  ;;  %929 = vmatpush.msra.mxu2 %v1751_v61  ;;  %v875_v12 = vperm.slane %v2081_v6, 6 }
 0x599   :  { %v761_v24 = vmul.f32 %v760_v8, %v758_v20  ;;  %v737_v25 = vadd.f32 1e-05, %v735_v21 }
 0x59b   :  { %1877 = vrsqrt.f32 %v737_v25  ;;  %v764_v27 = vadd.f32 %v763_v22, %v761_v24  ;;  %vm754_vm9 = vweird.f32 %v737_v25 }
 0x59d   :  { %1747 = vmatmul.msk.f32.vlgmr.msrb.gmra.mxu0 %vm80_vm0, %v764_v27 }
 0x5a1   :  { %v1878_v28 = vpop.eup %1877 }
 0x5a2   :  { %v749_v29 = vmul.f32 %v1878_v28, %v737_v25  ;;  %vm755_vm8 = vweird.f32 %v1878_v28 }
 0x5a3   :  { %vm756_vm10 = vmor %vm754_vm9, %vm755_vm8 }
 0x5a4   :  { %v750_v30 = vmul.f32 %v1878_v28, %v749_v29 }
 0x5a6   :  { %v751_v31 = vmul.f32 0.5, %v750_v30 }
 0x5a8   :  { %v752_v32 = vsub.f32 1.5, %v751_v31 }
 0x5aa   :  { %v753_v33 = vmul.f32 %v1878_v28, %v752_v32 }
 0x5ac   :  { %v757_v34 = vsel %vm756_vm10, %v1878_v28, %v753_v33 }
 0x5ad   :  { %v759_v35 = vmul.f32 %v757_v34, %v725_v51 }
 0x5af   :  { %v762_v16 = vmul.f32 %v760_v8, %v759_v35 }
 0x5b1   :  { %v765_v17 = vadd.f32 %v763_v22, %v762_v16  ;;  %v2335_v16 = vld [vmem:[#allocation5 + $0x8] sm:$0xff] }
 0x5b3   :  { %1748 = vmatmul.msk.f32.gmra.mxu0 %vm80_vm0, %v765_v17 }
 0x61a   :  { %v790_v38 = vpop.f32.mrf.mxu0 }
 0x61b   :  { %v791_v13 = vadd.f32 %v790_v38, %v766_v9 }
 0x61d   :  { %v796_v14 = vmax.f32 %v791_v13, 0.0 }
 0x61f   :  { %1749 = vmatmul.msk.f32.vlgmr.msrb.gmra.mxu1 %vm799_vm11, %v796_v14 }
 0x630   :  { %v793_v15 = vpop.f32.mrf.mxu0 }
 0x631   :  { %v794_v11 = vadd.f32 %v793_v15, %v766_v9 }
 0x633   :  { %v797_v39 = vmax.f32 %v794_v11, 0.0 }
 0x635   :  { %1750 = vmatmul.msk.f32.gmra.mxu1 %vm799_vm11, %v797_v39 }
 0x69c   :  { %v823_v42 = vpop.f32.mrf.mxu1 }
 0x69d   :  { %v824_v40 = vadd.f32 %v823_v42, %v798_v41 }
 0x69f   :  { %v829_v43 = vadd.f32 %v824_v40, %v764_v27 }
 0x6a1   :  { %v831_v44 = vsel %vm80_vm0, %v829_v43, 0.0 }
 0x6a2   :  { %832 = vadd.xlane.f32.xlu1 %v831_v44 }
 0x6b2   :  { %v826_v4 = vpop.f32.mrf.mxu1 }
 0x6b3   :  { %v827_v46 = vadd.f32 %v826_v4, %v798_v41 }
 0x6b5   :  { %v830_v47 = vadd.f32 %v827_v46, %v765_v17  ;;  %v907_v17 = vperm.slane %v2335_v16, 0 }
 0x6b7   :  { %v834_v48 = vsel %vm80_vm0, %v830_v47, 0.0 }
 0x6b8   :  { %835 = vadd.xlane.f32.xlu2 %v834_v48 }
 0x715   :  { %v833_v5 = vpop.xlane.xlu1 %832 }
 0x716   :  { %v837_v49 = vmul.f32 %v833_v5, %v2253_v45 }
 0x718   :  { %v839_v50 = vsub.f32 %v829_v43, %v837_v49 }
 0x71a   :  { %v841_v51 = vmul.f32 %v839_v50, %v839_v50 }
 0x71c   :  { %v843_v52 = vsel %vm80_vm0, %v841_v51, 0.0 }
 0x71d   :  { %844 = vadd.xlane.f32.xlu0 %v843_v52 }
 0x72b   :  { %v836_v53 = vpop.xlane.xlu2 %835 }
 0x72c   :  { %v838_v54 = vmul.f32 %v836_v53, %v2253_v45 }
 0x72e   :  { %v840_v55 = vsub.f32 %v830_v47, %v838_v54 }
 0x730   :  { %v842_v56 = vmul.f32 %v840_v55, %v840_v55 }
 0x732   :  { %v846_v57 = vsel %vm80_vm0, %v842_v56, 0.0 }
 0x733   :  { %847 = vadd.xlane.f32.xlu1 %v846_v57 }
 0x790   :  { %v845_v62 = vpop.xlane.xlu0 %844 }
 0x791   :  { %v849_v63 = vmul.f32 %v845_v62, %v2253_v45 }
 0x793   :  { %v851_v0 = vadd.f32 1e-05, %v849_v63 }
 0x795   :  { %1879 = vrsqrt.f32 %v851_v0  ;;  %vm859_vm13 = vweird.f32 %v851_v0 }
 0x79b   :  { %v1880_v1 = vpop.eup %1879 }
 0x79c   :  { %v854_v2 = vmul.f32 %v1880_v1, %v851_v0  ;;  %vm860_vm12 = vweird.f32 %v1880_v1 }
 0x79d   :  { %vm861_vm14 = vmor %vm859_vm13, %vm860_vm12 }
 0x79e   :  { %v855_v3 = vmul.f32 %v1880_v1, %v854_v2 }
 0x7a0   :  { %v856_v7 = vmul.f32 0.5, %v855_v3 }
 0x7a2   :  { %v857_v8 = vsub.f32 1.5, %v856_v7 }
 0x7a4   :  { %v858_v10 = vmul.f32 %v1880_v1, %v857_v8 }
 0x7a6   :  { %v862_v19 = vsel %vm861_vm14, %v1880_v1, %v858_v10  ;;  %v848_v20 = vpop.xlane.xlu1 %847 }
 0x7a7   :  { %v873_v21 = vmul.f32 %v862_v19, %v839_v50  ;;  %v850_v22 = vmul.f32 %v848_v20, %v2253_v45 }
 0x7a9   :  { %v876_v24 = vmul.f32 %v875_v12, %v873_v21  ;;  %v852_v25 = vadd.f32 1e-05, %v850_v22 }
 0x7ab   :  { %1881 = vrsqrt.f32 %v852_v25  ;;  %v2327_v26 = vadd.f32 %v878_v23, %v876_v24  ;;  %vm869_vm4 = vweird.f32 %v852_v25 }
 0x7ad   :  { %1771 = vmatmul.msk.f32.vlgmr.msra.gmra.mxu2 %vm80_vm0, %v2327_v26 }
 0x7b1   :  { %v1882_v27 = vpop.eup %1881 }
 0x7b2   :  { %v864_v28 = vmul.f32 %v1882_v27, %v852_v25  ;;  %vm870_vm15 = vweird.f32 %v1882_v27 }
 0x7b3   :  { %vm871_vm5 = vmor %vm869_vm4, %vm870_vm15 }
 0x7b4   :  { %v865_v29 = vmul.f32 %v1882_v27, %v864_v28 }
 0x7b6   :  { %v866_v30 = vmul.f32 0.5, %v865_v29 }
 0x7b8   :  { %v867_v31 = vsub.f32 1.5, %v866_v30 }
 0x7ba   :  { %v868_v32 = vmul.f32 %v1882_v27, %v867_v31 }
 0x7bc   :  { %v872_v33 = vsel %vm871_vm5, %v1882_v27, %v868_v32 }
 0x7bd   :  { %v874_v34 = vmul.f32 %v872_v33, %v840_v55 }
 0x7bf   :  { %v877_v6 = vmul.f32 %v875_v12, %v874_v34 }
 0x7c1   :  { %v2331_v35 = vadd.f32 %v878_v23, %v877_v6 }
 0x7c3   :  { %1772 = vmatmul.msk.f32.gmra.mxu2 %vm80_vm0, %v2331_v35 }
 0x830   :  { %v931_v18 = vpop.f32.mrf.mxu2 }
 0x831   :  { %v2338_v36 = vadd.f32 %v931_v18, %v907_v17 }
 0x833   :  { %958 = vrot.lane.b32.xlu0 %v2338_v36, %s2005_s15  ;;  %956 = vrot.lane.b32.xlu2 %v2338_v36, %s2007_s17  ;;  %v937_v37 = vmul.f32 0.35355338, %v2338_v36 }
 0x83b   :  { %954 = vrot.lane.b32.xlu2 %v2338_v36, %s2006_s16 }
 0x843   :  { %944 = vrot.lane.b32.xlu2 %v937_v37, %s2005_s15 }
 0x846   :  { %v934_v9 = vpop.f32.mrf.mxu2 }
 0x847   :  { %v2348_v38 = vadd.f32 %v934_v9, %v907_v17 }
 0x849   :  { %965 = vrot.lane.b32.xlu0 %v2348_v38, %s2005_s15  ;;  %963 = vrot.lane.b32.xlu1 %v2348_v38, %s2007_s17  ;;  %v938_v14 = vmul.f32 0.35355338, %v2348_v38 }
 0x851   :  { %967 = vrot.lane.b32.xlu0 %v2338_v36, %s2008_s18  ;;  %961 = vrot.lane.b32.xlu1 %v2348_v38, %s2006_s16 }
 0x859   :  { %942 = vrot.lane.b32.xlu0 %v937_v37, %s2007_s17 }
 0x88d   :  { %v2359_v13 = vpop.permute.xlu2 %956 }
 0x88e   :  { %1019 = vrot.lane.b32.xlu2 %v2359_v13, %s2008_s18 }
 0x895   :  { %v2374_v39 = vpop.permute.xlu2 %954 }
 0x896   :  { %949 = vrot.lane.b32.xlu2 %v938_v14, %s2007_s17 }
 0x89d   :  { %v945_v4 = vpop.permute.xlu2 %944 }
 0x89e   :  { %940 = vrot.lane.b32.xlu2 %v937_v37, %s2006_s16 }
 0x8a5   :  { %v2366_v15 = vpop.permute.xlu0 %958 }
 0x8a6   :  { %v1831_v11 = vpack.i.bf16 %v2366_v15, %v2359_v13  ;;  %1045 = vrot.lane.b32.xlu1 %v2366_v15, %s2008_s18  ;;  %1071 = vrot.lane.b32.xlu2 %v2348_v38, %s2008_s18 }
 0x8bb   :  { %v2376_v41 = vpop.permute.xlu0 %965  ;;  %v2378_v42 = vpop.permute.xlu1 %963 }
 0x8bc   :  { %v1836_v40 = vpack.i.bf16 %v2378_v42, %v2374_v39  ;;  %1149 = vrot.lane.b32.xlu0 %v2376_v41, %s2008_s18  ;;  %1123 = vrot.lane.b32.xlu1 %v2378_v42, %s2008_s18 }
 0x8c3   :  { %v968_v43 = vpop.permute.xlu0 %967  ;;  %v2391_v44 = vpop.permute.xlu1 %961 }
 0x8c4   :  { %1773 = vmatpush.xpose.msk.msra.mxu3 %vm142_vm1, %v968_v43  ;;  %951 = vrot.lane.b32.xlu0 %v938_v14, %s2005_s15 }
 0x8c5   :  { %993 = vrot.lane.b32.xlu1 %v2374_v39, %s2008_s18 }
 0x8c7   :  { %1774 = vmatmul.msk.f32.vlgmr.msra.gmra.mxu3 %vm142_vm1, %v937_v37 }
 0x8cb   :  { %v943_v47 = vpop.permute.xlu0 %942 }
 0x8cc   :  { %947 = vrot.lane.b32.xlu0 %v938_v14, %s2006_s16 }
 0x8cd   :  { %1097 = vrot.lane.b32.xlu1 %v2391_v44, %s2008_s18 }
 0x8e8   :  { %v1020_v46 = vpop.permute.xlu2 %1019 }
 0x8e9   :  { %1777 = vmatpush.xpose.msk.msrb.mxu2 %vm142_vm1, %v1020_v46 }
 0x8ec   :  { %1778 = vmatmul.msk.f32.vlgmr.msrb.gmra.mxu2 %vm142_vm1, %v943_v47 }
 0x8f0   :  { %v950_v5 = vpop.permute.xlu2 %949 }
 0x8f8   :  { %v941_v49 = vpop.permute.xlu2 %940 }
 0x900   :  { %v1072_v54 = vpop.permute.xlu2 %1071 }
 0x918   :  { %v1046_v48 = vpop.permute.xlu1 %1045 }
 0x919   :  { %1779 = vmatpush.xpose.msk.msrb.mxu3 %vm142_vm1, %v1046_v48 }
 0x91c   :  { %1780 = vmatmul.msk.f32.vlgmr.msrb.gmra.mxu3 %vm142_vm1, %v945_v4 }
 0x92e   :  { %v1150_v50 = vpop.permute.xlu0 %1149  ;;  %v1124_v51 = vpop.permute.xlu1 %1123 }
 0x92f   :  { %1785 = vmatpush.xpose.msk.msra.mxu2 %vm142_vm1, %v1124_v51  ;;  %1787 = vmatpush.xpose.msk.msra.mxu3 %vm142_vm1, %v1150_v50 }
 0x932   :  { %1786 = vmatmul.msk.f32.vlgmr.msra.gmra.mxu2 %vm142_vm1, %v950_v5 }
 0x936   :  { %v952_v52 = vpop.permute.xlu0 %951 }
 0x937   :  { %v994_v53 = vpop.permute.xlu1 %993  ;;  %1788 = vmatmul.msk.f32.vlgmr.msra.gmra.mxu3 %vm142_vm1, %v952_v52 }
 0x938   :  { %1775 = vmatpush.xpose.msk.msra.mxu0 %vm142_vm1, %v994_v53 }
 0x93b   :  { %1776 = vmatmul.msk.f32.vlgmr.msra.gmra.mxu0 %vm142_vm1, %v941_v49 }
 0x93c   :  { %1781 = vmatpush.xpose.msk.msrb.mxu0 %vm142_vm1, %v1072_v54 }
 0x93e   :  { %v948_v56 = vpop.permute.xlu0 %947 }
 0x93f   :  { %v1098_v55 = vpop.permute.xlu1 %1097 }
 0x940   :  { %1783 = vmatpush.xpose.msk.msra.mxu1 %vm142_vm1, %v1098_v55 }
 0x943   :  { %1782 = vmatmul.msk.f32.vlgmr.msrb.gmra.mxu0 %vm142_vm1, %v938_v14  ;;  %1784 = vmatmul.msk.f32.vlgmr.msra.gmra.mxu1 %vm142_vm1, %v948_v56 }
 0x94a   :  { %v2410_v57 = vpop.f32.mrf.mxu3 }
 0x94b   :  { %v1175_v58 = vsel %vm142_vm1, %v2410_v57, -inf }
 0x94c   :  { %1176 = vmax.xlane.f32.xlu1 %v1175_v58 }
 0x96f   :  { %v1042_v59 = vpop.f32.mrf.mxu2 }
 0x970   :  { %v1181_v60 = vsel %vm142_vm1, %v1042_v59, -inf }
 0x971   :  { %1182 = vmax.xlane.f32.xlu1 %v1181_v60 }
 0x99f   :  { %v1068_v61 = vpop.f32.mrf.mxu3 }
 0x9a0   :  { %v1184_v62 = vsel %vm142_vm1, %v1068_v61, -inf }
 0x9a1   :  { %1185 = vmax.xlane.f32.xlu0 %v1184_v62 }
 0x9b5   :  { %v1146_v63 = vpop.f32.mrf.mxu2 }
 0x9b6   :  { %v1193_v0 = vsel %vm142_vm1, %v1146_v63, -inf }
 0x9b7   :  { %1194 = vmax.xlane.f32.xlu1 %v1193_v0 }
 0x9b8   :  { %v1016_v1 = vpop.f32.mrf.mxu0 }
 0x9b9   :  { %v1178_v2 = vsel %vm142_vm1, %v1016_v1, -inf }
 0x9ba   :  { %1179 = vmax.xlane.f32.xlu2 %v1178_v2  ;;  %v1172_v12 = vpop.f32.mrf.mxu3 }
 0x9bb   :  { %v1196_v19 = vsel %vm142_vm1, %v1172_v12, -inf }
 0x9bf   :  { %v2424_v20 = vpop.xlane.xlu1 %1176 }
 0x9c0   :  { %v1120_v3 = vpop.f32.mrf.mxu1  ;;  %v2418_v7 = vpop.f32.mrf.mxu0  ;;  %v1199_v39 = vsub.f32 %v2410_v57, %v2424_v20 }
 0x9c1   :  { %v1190_v8 = vsel %vm142_vm1, %v1120_v3, -inf  ;;  %v1187_v10 = vsel %vm142_vm1, %v2418_v7, -inf }
 0x9c2   :  { %1191 = vmax.xlane.f32.xlu0 %v1190_v8  ;;  %1188 = vmax.xlane.f32.xlu2 %v1187_v10  ;;  %v1207_v42 = vmul.f32 1.442695, %v1199_v39 }
 0x9ca   :  { %1197 = vmax.xlane.f32.xlu2 %v1196_v19 }
 0x9e2   :  { %1832 = vrot.lane.b32.xlu2 %v1831_v11, %s2009_s19 }
 0x9e4   :  { %v1183_v21 = vpop.xlane.xlu1 %1182 }
 0x9e5   :  { %v1201_v22 = vsub.f32 %v1042_v59, %v1183_v21 }
 0x9e7   :  { %v1211_v23 = vmul.f32 1.442695, %v1201_v22 }
 0x9e9   :  { %1883 = vpow2.f32 %v1211_v23 }
 0x9ef   :  { %v1884_v24 = vpop.eup %1883 }
 0x9f0   :  { %v1229_v25 = vsel %vm142_vm1, %v1884_v24, 0.0 }
 0x9f1   :  { %1230 = vadd.xlane.f32.xlu0 %v1229_v25 }
 0xa14   :  { %v1186_v27 = vpop.xlane.xlu0 %1185 }
 0xa15   :  { %v1202_v28 = vsub.f32 %v1068_v61, %v1186_v27 }
 0xa17   :  { %v1213_v29 = vmul.f32 1.442695, %v1202_v28 }
 0xa19   :  { %1885 = vpow2.f32 %v1213_v29 }
 0xa1f   :  { %v1886_v30 = vpop.eup %1885 }
 0xa20   :  { %v1232_v31 = vsel %vm142_vm1, %v1886_v30, 0.0 }
 0xa21   :  { %1233 = vadd.xlane.f32.xlu1 %v1232_v31 }
 0xa2a   :  { %v1195_v6 = vpop.xlane.xlu1 %1194 }
 0xa2b   :  { %v1205_v13 = vsub.f32 %v1146_v63, %v1195_v6 }
 0xa2d   :  { %v1180_v32 = vpop.xlane.xlu2 %1179  ;;  %v1219_v11 = vmul.f32 1.442695, %v1205_v13 }
 0xa2e   :  { %v1200_v33 = vsub.f32 %v1016_v1, %v1180_v32 }
 0xa30   :  { %v1209_v34 = vmul.f32 1.442695, %v1200_v33 }
 0xa32   :  { %1887 = vpow2.f32 %v1209_v34 }
 0xa35   :  { %v1192_v17 = vpop.xlane.xlu0 %1191  ;;  %v1189_v18 = vpop.xlane.xlu2 %1188 }
 0xa36   :  { %v1204_v37 = vsub.f32 %v1120_v3, %v1192_v17  ;;  %v1203_v56 = vsub.f32 %v2418_v7, %v1189_v18 }
 0xa38   :  { %v2432_v9 = vpop.eup %1887  ;;  %v1217_v14 = vmul.f32 1.442695, %v1204_v37  ;;  %v1215_v60 = vmul.f32 1.442695, %v1203_v56 }
 0xa39   :  { %v1226_v15 = vsel %vm142_vm1, %v2432_v9, 0.0 }
 0xa3a   :  { %1889 = vpow2.f32 %v1217_v14  ;;  %1227 = vadd.xlane.f32.xlu2 %v1226_v15  ;;  %v1758_v14 = vld [vmem:[%s2570_s2 + $0x38] sm:$0xff]  ;;  %v1757_v15 = vld [vmem:[%s2570_s2 + $0x30] sm:$0xff] }
 0xa3b   :  { %1891 = vpow2.f32 %v1219_v11  ;;  %v1756_v11 = vld [vmem:[%s2570_s2 + $0x28] sm:$0xff] }
 0xa3d   :  { %v1198_v43 = vpop.xlane.xlu2 %1197 }
 0xa3e   :  { %v1206_v4 = vsub.f32 %v1172_v12, %v1198_v43  ;;  %v1755_v43 = vld [vmem:[%s2570_s2 + $0x20] sm:$0xff]  ;;  %s1705_s2 = sshll.u32 %s2574_s6, 4  ;;  %s1706_s2 = int_to_ptr.hbm [resolvable:$true] %s1705_s2 }
 0xa40   :  { %v2436_v46 = vpop.eup %1889  ;;  %v1221_v47 = vmul.f32 1.442695, %v1206_v4 }
 0xa41   :  { %v1238_v48 = vsel %vm142_vm1, %v2436_v46, 0.0  ;;  %v1892_v49 = vpop.eup %1891 }
 0xa42   :  { %1893 = vpow2.f32 %v1221_v47  ;;  %1239 = vadd.xlane.f32.xlu0 %v1238_v48  ;;  %v1241_v53 = vsel %vm142_vm1, %v1892_v49, 0.0 }
 0xa45   :  { %v1833_v5 = vpop.permute.xlu2 %1832 }
 0xa46   :  { %v1835_v50 = vunpack.i.h.bf16 %v1833_v5  ;;  %v1834_v51 = vunpack.i.l.bf16 %v1833_v5 }
 0xa48   :  { %v1894_v52 = vpop.eup %1893  ;;  %1336 = vmatpush.msrb.mxu2 %v1834_v51  ;;  %1362 = vmatpush.msrb.mxu3 %v1835_v50 }
 0xa49   :  { %v1244_v54 = vsel %vm142_vm1, %v1894_v52, 0.0 }
 0xa4a   :  { %1242 = vadd.xlane.f32.xlu0 %v1241_v53  ;;  %1245 = vadd.xlane.f32.xlu1 %v1244_v54 }
 0xa52   :  { %1393 = vrot.lane.b32.xlu2 %v2391_v44, %s2009_s19 }
 0xa5e   :  { %1445 = vrot.lane.b32.xlu0 %v2376_v41, %s2009_s19 }
 0xa63   :  { %1837 = vrot.lane.b32.xlu1 %v1836_v40, %s2009_s19 }
 0xa64   :  { %v1231_v55 = vpop.xlane.xlu0 %1230 }
 0xa65   :  { %1895 = vrcp.f32 %v1231_v55 }
 0xa66   :  { %1897 = vpow2.f32 %v1215_v60 }
 0xa67   :  { %1899 = vpow2.f32 %v1207_v42 }
 0xa6b   :  { %v1896_v58 = vpop.eup %1895  ;;  %1263 = vrot.lane.b32.xlu1 %v2338_v36, %s2009_s19 }
 0xa6c   :  { %v1257_v59 = vmul.f32 %v1896_v58, %v1884_v24  ;;  %v1898_v41 = vpop.eup %1897 }
 0xa6d   :  { %v1235_v40 = vsel %vm142_vm1, %v1898_v41, 0.0  ;;  %v1900_v44 = vpop.eup %1899 }
 0xa6e   :  { %1791 = vmatmul.msk.f32.vlgmr.msrb.gmra.mxu2 %vm142_vm1, %v1257_v59  ;;  %v1223_v36 = vsel %vm142_vm1, %v1900_v44, 0.0  ;;  %v1501_v59 = vperm.slane %v2335_v16, 1 }
 0xa73   :  { %1367 = vrot.lane.b32.xlu1 %v2348_v38, %s2009_s19 }
 0xa7b   :  { %1236 = vadd.xlane.f32.xlu2 %v1235_v40 }
 0xa88   :  { %1224 = vadd.xlane.f32.xlu0 %v1223_v36 }
 0xa94   :  { %v1234_v61 = vpop.xlane.xlu1 %1233 }
 0xa95   :  { %1901 = vrcp.f32 %v1234_v61 }
 0xa9b   :  { %v1902_v62 = vpop.eup %1901 }
 0xa9c   :  { %v1258_v63 = vmul.f32 %v1902_v62, %v1886_v30 }
 0xa9e   :  { %1792 = vmatmul.msk.f32.vlgmr.msrb.gmra.mxu3 %vm142_vm1, %v1258_v63 }
 0xaad   :  { %v1228_v1 = vpop.xlane.xlu2 %1227 }
 0xab5   :  { %v1240_v38 = vpop.xlane.xlu0 %1239  ;;  %v1394_v23 = vpop.permute.xlu2 %1393 }
 0xabd   :  { %v1246_v0 = vpop.xlane.xlu1 %1245  ;;  %v1243_v57 = vpop.xlane.xlu0 %1242 }
 0xabe   :  { %1903 = vrcp.f32 %v1246_v0 }
 0xabf   :  { %1905 = vrcp.f32 %v1228_v1 }
 0xac0   :  { %1907 = vrcp.f32 %v1243_v57 }
 0xac1   :  { %1909 = vrcp.f32 %v1240_v38 }
 0xac4   :  { %v1904_v2 = vpop.eup %1903 }
 0xac5   :  { %v1262_v3 = vmul.f32 %v1904_v2, %v1894_v52  ;;  %v1906_v8 = vpop.eup %1905 }
 0xac6   :  { %v1908_v10 = vpop.eup %1907  ;;  %v1256_v21 = vmul.f32 %v1906_v8, %v2432_v9  ;;  %v1761_v8 = vld [vmem:[%s2571_s3 + $0x30] sm:$0xff] }
 0xac7   :  { %v1261_v22 = vmul.f32 %v1908_v10, %v1892_v49  ;;  %v1910_v24 = vpop.eup %1909  ;;  %v1760_v10 = vld [vmem:[%s2571_s3 + $0x28] sm:$0xff] }
 0xac8   :  { %v1260_v27 = vmul.f32 %v1910_v24, %v2436_v46  ;;  %v1768_v24 = vld [vmem:[%s2572_s4 + $0x68] sm:$0xff] }
 0xad0   :  { %v1446_v7 = vpop.permute.xlu0 %1445 }
 0xad1   :  { %1466 = vmatpush.msra.mxu3 %v1446_v7 }
 0xad2   :  { %1796 = vmatmul.msk.f32.vlgmr.msra.gmra.mxu3 %vm142_vm1, %v1262_v3 }
 0xad5   :  { %v1838_v12 = vpop.permute.xlu1 %1837 }
 0xad6   :  { %v1840_v19 = vunpack.i.h.bf16 %v1838_v12  ;;  %v1839_v20 = vunpack.i.l.bf16 %v1838_v12  ;;  %v1759_v12 = vld [vmem:[%s2571_s3 + $0x20] sm:$0xff] }
 0xad8   :  { %1310 = vmatpush.msrb.mxu1 %v1839_v20  ;;  %1440 = vmatpush.msra.mxu2 %v1840_v19 }
 0xad9   :  { %1790 = vmatmul.msk.f32.vlgmr.msrb.gmra.mxu1 %vm142_vm1, %v1256_v21  ;;  %1795 = vmatmul.msk.f32.vlgmr.msra.gmra.mxu2 %vm142_vm1, %v1261_v22  ;;  %v1770_v22 = vld [vmem:[%s2572_s4 + $0x78] sm:$0xff] }
 0xada   :  { %1414 = vmatpush.msra.mxu1 %v1394_v23  ;;  %v1769_v23 = vld [vmem:[%s2572_s4 + $0x70] sm:$0xff]  ;;  %1630 = vmatpush.msrb.mxu2 %v1770_v22 }
 0xadc   :  { %1631 = vmatpush.msrb.mxu2 %v1769_v23 }
 0xadd   :  { %v1264_v25 = vpop.permute.xlu1 %1263 }
 0xade   :  { %1284 = vmatpush.msra.mxu0 %v1264_v25  ;;  %1632 = vmatpush.msrb.mxu2 %v1768_v24 }
 0xae1   :  { %1794 = vmatmul.msk.f32.vlgmr.msra.gmra.mxu1 %vm142_vm1, %v1260_v27 }
 0xae5   :  { %v1368_v28 = vpop.permute.xlu1 %1367 }
 0xae6   :  { %1388 = vmatpush.msrb.mxu0 %v1368_v28  ;;  %v1767_v28 = vld [vmem:[%s2572_s4 + $0x60] sm:$0xff] }
 0xae7   :  { %1633 = vmatpush.msrb.mxu2 %v1767_v28 }
 0xaee   :  { %v1237_v30 = vpop.xlane.xlu2 %1236 }
 0xaf1   :  { %v1338_v37 = vpop.f32.mrf.mxu2 }
 0xafb   :  { %v1225_v29 = vpop.xlane.xlu0 %1224 }
 0xafc   :  { %1911 = vrcp.f32 %v1225_v29 }
 0xafd   :  { %1913 = vrcp.f32 %v1237_v30 }
 0xb02   :  { %v1912_v31 = vpop.eup %1911 }
 0xb03   :  { %v1255_v32 = vmul.f32 %v1912_v31, %v1900_v44  ;;  %v1914_v33 = vpop.eup %1913 }
 0xb04   :  { %v1259_v34 = vmul.f32 %v1914_v33, %v1898_v41 }
 0xb05   :  { %1789 = vmatmul.msk.f32.vlgmr.msra.gmra.mxu0 %vm142_vm1, %v1255_v32  ;;  %v1766_v32 = vld [vmem:[%s2572_s4 + $0x58] sm:$0xff] }
 0xb06   :  { %1520 = vmatpush.msra.mxu0 %v1758_v14  ;;  %1634 = vmatpush.msrb.mxu2 %v1766_v32 }
 0xb08   :  { %1521 = vmatpush.msra.mxu0 %v1757_v15 }
 0xb0a   :  { %1522 = vmatpush.msra.mxu0 %v1756_v11  ;;  %v1580_v11 = vperm.slane %v2335_v16, 3 }
 0xb0c   :  { %1523 = vmatpush.msra.mxu0 %v1755_v43 }
 0xb0d   :  { %1793 = vmatmul.msk.f32.vlgmr.msrb.gmra.mxu0 %vm142_vm1, %v1259_v34 }
 0xb21   :  { %v1364_v6 = vpop.f32.mrf.mxu3 }
 0xb55   :  { %v1468_v17 = vpop.f32.mrf.mxu3 }
 0xb56   :  { %v1312_v18 = vpop.f32.mrf.mxu1  ;;  %1495 = vrot.lane.b32.xlu2 %v1468_v17, %s2010_s20 }
 0xb57   :  { %1472 = vrot.lane.b32.xlu1 %v1312_v18, %s2003_s30 }
 0xb5c   :  { %v1442_v13 = vpop.f32.mrf.mxu2 }
 0xb5e   :  { %v1416_v9 = vpop.f32.mrf.mxu1 }
 0xb5f   :  { %1487 = vrot.lane.b32.xlu0 %v1416_v9, %s2003_s30  ;;  %1476 = vrot.lane.b32.xlu1 %v1338_v37, %s2011_s21  ;;  %v1577_v37 = vperm.slane %v2335_v16, 2 }
 0xb67   :  { %1480 = vrot.lane.b32.xlu1 %v1364_v6, %s2010_s20 }
 0xb6f   :  { %1491 = vrot.lane.b32.xlu1 %v1442_v13, %s2011_s21 }
 0xb82   :  { %v1286_v47 = vpop.f32.mrf.mxu0 }
 0xb8a   :  { %v1390_v52 = vpop.f32.mrf.mxu0 }
 0xbb0   :  { %v1496_v55 = vpop.permute.xlu2 %1495 }
 0xbc9   :  { %v1473_v4 = vpop.permute.xlu1 %1472 }
 0xbca   :  { %v1483_v48 = vsel %vm142_vm1, %v1286_v47, %v1473_v4 }
 0xbd1   :  { %v1477_v46 = vpop.permute.xlu1 %1476  ;;  %v1488_v51 = vpop.permute.xlu0 %1487 }
 0xbd2   :  { %v1484_v5 = vsel %vm658_vm2, %v1483_v48, %v1477_v46  ;;  %v1498_v53 = vsel %vm142_vm1, %v1390_v52, %v1488_v51  ;;  %v1765_v52 = vld [vmem:[%s2572_s4 + $0x50] sm:$0xff] }
 0xbd3   :  { %1635 = vmatpush.msrb.mxu2 %v1765_v52 }
 0xbd9   :  { %v1481_v49 = vpop.permute.xlu1 %1480 }
 0xbda   :  { %v1485_v50 = vsel %vm660_vm3, %v1484_v5, %v1481_v49 }
 0xbdb   :  { %1797 = vmatmul.msk.f32.vlgmr.msra.gmra.mxu0 %vm80_vm0, %v1485_v50 }
 0xbe1   :  { %v1492_v54 = vpop.permute.xlu1 %1491 }
 0xbe2   :  { %v1499_v56 = vsel %vm658_vm2, %v1498_v53, %v1492_v54  ;;  %v1764_v53 = vld [vmem:[%s2572_s4 + $0x48] sm:$0xff]  ;;  %v1763_v54 = vld [vmem:[%s2572_s4 + $0x40] sm:$0xff]  ;;  %s2013_s4 = smov [#allocation7]  }
 0xbe3   :  { %v1500_v58 = vsel %vm660_vm3, %v1499_v56, %v1496_v55  ;;  %1636 = vmatpush.msrb.mxu2 %v1764_v53  ;;  %v1583_v55 = vperm.slane %v2335_v16, 4  ;;  %s1703_s19 = sshll.u32 %s2013_s4, 4  ;;  %s1704_s19 = int_to_ptr.vmem [resolvable:$true] %s1703_s19 }
 0xbe4   :  { %1798 = vmatmul.msk.f32.gmra.mxu0 %vm80_vm0, %v1500_v58 }
 0xbe5   :  { %1637 = vmatpush.msrb.mxu2 %v1763_v54 }
 0xc58   :  { %v1525_v60 = vpop.f32.mrf.mxu0 }
 0xc59   :  { %v1526_v39 = vadd.f32 %v1525_v60, %v1501_v59 }
 0xc5b   :  { %v1531_v41 = vadd.f32 %v1526_v39, %v2327_v26 }
 0xc5d   :  { %v1533_v42 = vsel %vm80_vm0, %v1531_v41, 0.0 }
 0xc5e   :  { %1534 = vadd.xlane.f32.xlu1 %v1533_v42  ;;  %v1615_v42 = vperm.slane %v2335_v16, 5 }
 0xc61   :  { %v1528_v40 = vpop.f32.mrf.mxu0 }
 0xc62   :  { %v1529_v44 = vadd.f32 %v1528_v40, %v1501_v59 }
 0xc64   :  { %v1532_v36 = vadd.f32 %v1529_v44, %v2331_v35  ;;  %v1762_v35 = vld [vmem:[%s2571_s3 + $0x38] sm:$0xff] }
 0xc65   :  { %1602 = vmatpush.msrb.mxu1 %v1762_v35 }
 0xc66   :  { %v1536_v61 = vsel %vm80_vm0, %v1532_v36, 0.0 }
 0xc67   :  { %1537 = vadd.xlane.f32.xlu0 %v1536_v61  ;;  %1603 = vmatpush.msrb.mxu1 %v1761_v8 }
 0xc69   :  { %1604 = vmatpush.msrb.mxu1 %v1760_v10 }
 0xc6b   :  { %1605 = vmatpush.msrb.mxu1 %v1759_v12 }
 0xcd1   :  { %v1535_v62 = vpop.xlane.xlu1 %1534 }
 0xcd2   :  { %v1539_v63 = vmul.f32 %v1535_v62, %v2253_v45 }
 0xcd4   :  { %v1541_v38 = vsub.f32 %v1531_v41, %v1539_v63 }
 0xcd6   :  { %v1543_v0 = vmul.f32 %v1541_v38, %v1541_v38 }
 0xcd8   :  { %v1545_v57 = vsel %vm80_vm0, %v1543_v0, 0.0 }
 0xcd9   :  { %1546 = vadd.xlane.f32.xlu2 %v1545_v57 }
 0xcda   :  { %v1538_v1 = vpop.xlane.xlu0 %1537 }
 0xcdb   :  { %v1540_v26 = vmul.f32 %v1538_v1, %v2253_v45 }
 0xcdd   :  { %v1542_v2 = vsub.f32 %v1532_v36, %v1540_v26 }
 0xcdf   :  { %v1544_v3 = vmul.f32 %v1542_v2, %v1542_v2 }
 0xce1   :  { %v1548_v7 = vsel %vm80_vm0, %v1544_v3, 0.0 }
 0xce2   :  { %1549 = vadd.xlane.f32.xlu1 %v1548_v7 }
 0xd4c   :  { %v1547_v19 = vpop.xlane.xlu2 %1546 }
 0xd4d   :  { %v1551_v20 = vmul.f32 %v1547_v19, %v2253_v45 }
 0xd4f   :  { %v1553_v21 = vadd.f32 1e-05, %v1551_v20 }
 0xd51   :  { %1915 = vrsqrt.f32 %v1553_v21  ;;  %vm1561_vm2 = vweird.f32 %v1553_v21 }
 0xd55   :  { %v1550_v25 = vpop.xlane.xlu1 %1549 }
 0xd56   :  { %v1552_v27 = vmul.f32 %v1550_v25, %v2253_v45 }
 0xd57   :  { %v1916_v29 = vpop.eup %1915 }
 0xd58   :  { %v1556_v30 = vmul.f32 %v1916_v29, %v1553_v21  ;;  %v1554_v31 = vadd.f32 1e-05, %v1552_v27  ;;  %vm1562_vm1 = vweird.f32 %v1916_v29 }
 0xd59   :  { %vm1563_vm3 = vmor %vm1561_vm2, %vm1562_vm1 }
 0xd5a   :  { %v1557_v33 = vmul.f32 %v1916_v29, %v1556_v30  ;;  %1917 = vrsqrt.f32 %v1554_v31  ;;  %vm1571_vm7 = vweird.f32 %v1554_v31 }
 0xd5c   :  { %v1558_v34 = vmul.f32 0.5, %v1557_v33  ;;  %v1691_v33 = vperm.slane %v2335_v16, 6 }
 0xd5e   :  { %v1559_v6 = vsub.f32 1.5, %v1558_v34 }
 0xd60   :  { %v1918_v17 = vpop.eup %1917  ;;  %v1560_v18 = vmul.f32 %v1916_v29, %v1559_v6 }
 0xd61   :  { %v1566_v9 = vmul.f32 %v1918_v17, %v1554_v31  ;;  %vm1572_vm6 = vweird.f32 %v1918_v17 }
 0xd62   :  { %v1564_v13 = vsel %vm1563_vm3, %v1916_v29, %v1560_v18  ;;  %vm1573_vm8 = vmor %vm1571_vm7, %vm1572_vm6 }
 0xd63   :  { %v1575_v14 = vmul.f32 %v1564_v13, %v1541_v38  ;;  %v1567_v15 = vmul.f32 %v1918_v17, %v1566_v9 }
 0xd65   :  { %v1578_v43 = vmul.f32 %v1577_v37, %v1575_v14  ;;  %v1568_v4 = vmul.f32 0.5, %v1567_v15 }
 0xd67   :  { %v1569_v46 = vsub.f32 1.5, %v1568_v4  ;;  %v1581_v47 = vadd.f32 %v1580_v11, %v1578_v43 }
 0xd69   :  { %v1570_v48 = vmul.f32 %v1918_v17, %v1569_v46  ;;  %1799 = vmatmul.msk.f32.vlgmr.msrb.gmra.mxu1 %vm80_vm0, %v1581_v47 }
 0xd6b   :  { %v1574_v5 = vsel %vm1573_vm8, %v1918_v17, %v1570_v48 }
 0xd6c   :  { %v1576_v49 = vmul.f32 %v1574_v5, %v1542_v2 }
 0xd6e   :  { %v1579_v50 = vmul.f32 %v1577_v37, %v1576_v49 }
 0xd70   :  { %v1582_v51 = vadd.f32 %v1580_v11, %v1579_v50 }
 0xd72   :  { %1800 = vmatmul.msk.f32.gmra.mxu1 %vm80_vm0, %v1582_v51 }
 0xde6   :  { %v1607_v56 = vpop.f32.mrf.mxu1 }
 0xde7   :  { %v1608_v58 = vadd.f32 %v1607_v56, %v1583_v55 }
 0xde9   :  { %v1613_v59 = vmax.f32 %v1608_v58, 0.0 }
 0xdeb   :  { %1801 = vmatmul.msk.f32.vlgmr.msrb.gmra.mxu2 %vm799_vm11, %v1613_v59 }
 0xdef   :  { %v1610_v60 = vpop.f32.mrf.mxu1 }
 0xdf0   :  { %v1611_v39 = vadd.f32 %v1610_v60, %v1583_v55 }
 0xdf2   :  { %v1614_v41 = vmax.f32 %v1611_v39, 0.0 }
 0xdf4   :  { %1802 = vmatmul.msk.f32.gmra.mxu2 %vm799_vm11, %v1614_v41 }
 0xe6e   :  { %v1639_v40 = vpop.f32.mrf.mxu2 }
 0xe6f   :  { %v1640_v44 = vadd.f32 %v1639_v40, %v1615_v42 }
 0xe71   :  { %v1645_v36 = vadd.f32 %v1640_v44, %v1581_v47 }
 0xe73   :  { %v1647_v61 = vsel %vm80_vm0, %v1645_v36, 0.0 }
 0xe74   :  { %1648 = vadd.xlane.f32.xlu1 %v1647_v61 }
 0xe77   :  { %v1642_v62 = vpop.f32.mrf.mxu2 }
 0xe78   :  { %v1643_v63 = vadd.f32 %v1642_v62, %v1615_v42 }
 0xe7a   :  { %v1646_v38 = vadd.f32 %v1643_v63, %v1582_v51 }
 0xe7c   :  { %v1650_v0 = vsel %vm80_vm0, %v1646_v38, 0.0 }
 0xe7d   :  { %1651 = vadd.xlane.f32.xlu0 %v1650_v0 }
 0xee7   :  { %v1649_v57 = vpop.xlane.xlu1 %1648 }
 0xee8   :  { %v1653_v1 = vmul.f32 %v1649_v57, %v2253_v45 }
 0xeea   :  { %v1655_v26 = vsub.f32 %v1645_v36, %v1653_v1 }
 0xeec   :  { %v1657_v2 = vmul.f32 %v1655_v26, %v1655_v26 }
 0xeee   :  { %v1659_v3 = vsel %vm80_vm0, %v1657_v2, 0.0 }
 0xeef   :  { %1660 = vadd.xlane.f32.xlu2 %v1659_v3 }
 0xef0   :  { %v1652_v7 = vpop.xlane.xlu0 %1651 }
 0xef1   :  { %v1654_v35 = vmul.f32 %v1652_v7, %v2253_v45 }
 0xef3   :  { %v1656_v8 = vsub.f32 %v1646_v38, %v1654_v35 }
 0xef5   :  { %v1658_v10 = vmul.f32 %v1656_v8, %v1656_v8 }
 0xef7   :  { %v1662_v12 = vsel %vm80_vm0, %v1658_v10, 0.0 }
 0xef8   :  { %1663 = vadd.xlane.f32.xlu1 %v1662_v12 }
 0xf62   :  { %v1661_v19 = vpop.xlane.xlu2 %1660 }
 0xf63   :  { %v1665_v20 = vmul.f32 %v1661_v19, %v2253_v45 }
 0xf65   :  { %v1667_v21 = vadd.f32 1e-05, %v1665_v20 }
 0xf67   :  { %1919 = vrsqrt.f32 %v1667_v21  ;;  %vm1675_vm10 = vweird.f32 %v1667_v21 }
 0xf6b   :  { %v1664_v22 = vpop.xlane.xlu1 %1663 }
 0xf6c   :  { %v1666_v23 = vmul.f32 %v1664_v22, %v2253_v45  ;;  %v1694_v45 = vperm.slane %v2335_v16, 7 }
 0xf6d   :  { %v1920_v24 = vpop.eup %1919 }
 0xf6e   :  { %v1670_v25 = vmul.f32 %v1920_v24, %v1667_v21  ;;  %v1668_v27 = vadd.f32 1e-05, %v1666_v23  ;;  %vm1676_vm9 = vweird.f32 %v1920_v24 }
 0xf6f   :  { %vm1677_vm11 = vmor %vm1675_vm10, %vm1676_vm9 }
 0xf70   :  { %v1671_v28 = vmul.f32 %v1920_v24, %v1670_v25  ;;  %1921 = vrsqrt.f32 %v1668_v27  ;;  %vm1685_vm13 = vweird.f32 %v1668_v27 }
 0xf72   :  { %v1672_v29 = vmul.f32 0.5, %v1671_v28 }
 0xf74   :  { %v1673_v30 = vsub.f32 1.5, %v1672_v29 }
 0xf76   :  { %v1922_v31 = vpop.eup %1921  ;;  %v1674_v32 = vmul.f32 %v1920_v24, %v1673_v30 }
 0xf77   :  { %v1680_v34 = vmul.f32 %v1922_v31, %v1668_v27  ;;  %vm1686_vm12 = vweird.f32 %v1922_v31 }
 0xf78   :  { %v1678_v6 = vsel %vm1677_vm11, %v1920_v24, %v1674_v32  ;;  %vm1687_vm14 = vmor %vm1685_vm13, %vm1686_vm12 }
 0xf79   :  { %v1689_v17 = vmul.f32 %v1678_v6, %v1655_v26  ;;  %v1681_v18 = vmul.f32 %v1922_v31, %v1680_v34 }
 0xf7b   :  { %v1692_v37 = vmul.f32 %v1691_v33, %v1689_v17  ;;  %v1682_v9 = vmul.f32 0.5, %v1681_v18 }
 0xf7d   :  { %v1683_v13 = vsub.f32 1.5, %v1682_v9  ;;  %v1695_v14 = vadd.f32 %v1694_v45, %v1692_v37 }
 0xf7f   :  { %v1684_v15 = vmul.f32 %v1922_v31, %v1683_v13  ;;  %1697 = vst.msk [vmem:[#allocation7] sm:$0xff] %vm80_vm0, %v1695_v14 }
 0xf81   :  { %v1688_v11 = vsel %vm1687_vm14, %v1922_v31, %v1684_v15 }
 0xf82   :  { %v1690_v43 = vmul.f32 %v1688_v11, %v1656_v8 }
 0xf84   :  { %v1693_v4 = vmul.f32 %v1691_v33, %v1690_v43 }
 0xf86   :  { %v1696_v16 = vadd.f32 %v1694_v45, %v1693_v4 }
 0xf88   :  { %1698 = vst.msk [vmem:[#allocation7 + $0x8] sm:$0xff] %vm80_vm0, %v1696_v16 }
 0xf89   :  { %1711 = dma.vmem_to_hbm [thread:$0]  %s1704_s19, 256, %s1706_s2, [#allocation4], %s2002_s29, %s2002_s29, %s2003_s30  }
 0xf8a   :  { %1999 = dma.done.wait [#allocation4], 256  }
 0xf8b   :  { %2000 = vsyncadd [#allocation4], 4294967040 }
 0xf8c   :  { %1716 = vsyncpa [#allocation3], 1 }
 0xf8d   :  { %1717 = vsyncpa [#allocation6], 1 }
 0xf8e   :  { %1718 = vsyncpa [#allocation4], 1 }

</bundles_post_ra>
